<compile_context>
chip_gen: v6e
topology: v6e:2x2x1
jax: 0.10.0
libtpu: 0.0.40
codegen_flags: <defaults>
</compile_context>

<pallas_src>
import functools
from math import floor

import jax
import jax.numpy as jnp
from jax.experimental import pallas as pl
from jax.experimental.pallas import tpu as pltpu


def _round_up(x, m):
    return ((x + m - 1) // m) * m


_VMEM_BUDGET = None


def _vmem_budget_bytes():
    """75% of physical VMEM (128 MiB on v5e/v6e, 64 MiB on v7x); 48 MiB fallback."""
    global _VMEM_BUDGET
    if _VMEM_BUDGET is None:
        try:
            cap = int(pltpu.get_tpu_info().vmem_capacity_bytes)
        except Exception:
            cap = 64 * 1024 * 1024
        _VMEM_BUDGET = max(32 * 1024 * 1024, (cap * 3) // 4)
    return _VMEM_BUDGET


# ----------------------------------------------------------------------------
# Pallas kernels
# ----------------------------------------------------------------------------
def _conv_pool_kernel(p_ref, w_ref, b_ref, o_ref, *, n_quads, pool_method):
    """One MXU matmul per row tile + VPU pooling reduce + bias.

    p_ref: (n_quads*tile_r, Ktot)  bf16 im2col patches (quadrant-interleaved)
    w_ref: (Ktot, Coutp)           bf16 tap-folded conv weight (lane-dense N)
    b_ref: (1, Coutp)              f32 bias
    o_ref: (tile_r, Coutp)         bf16 pooled conv output
    """
    t = o_ref.shape[0]
    acc = jnp.dot(p_ref[...], w_ref[...], preferred_element_type=jnp.float32)
    pooled = acc[0:t, :]
    for q in range(1, n_quads):                 # static sublane slices (VPU)
        blk = acc[q * t:(q + 1) * t, :]
        if pool_method == "max":
            pooled = jnp.maximum(pooled, blk)
        else:                                   # "avg"
            pooled = pooled + blk
    if pool_method != "max":
        pooled = pooled * (1.0 / float(n_quads))
    o_ref[...] = (pooled + b_ref[...]).astype(o_ref.dtype)


def _dense_fused_kernel(x_ref, w_ref, b_ref, o_ref, *, activation):
    """Single-K-step matmul + bias + activation (no scratch accumulator)."""
    y = jnp.dot(x_ref[...], w_ref[...], preferred_element_type=jnp.float32)
    y = y + b_ref[...]
    if activation == "relu":
        y = jnp.maximum(y, 0.0)
    elif activation == "tanh":
        y = jnp.tanh(y)
    o_ref[...] = y.astype(o_ref.dtype)


def _dense_acc_kernel(x_ref, w_ref, b_ref, o_ref, acc_ref, *, activation):
    """Tiled (M, N, K) matmul with f32 VMEM accumulator (only when K is tiled)."""
    @pl.when(pl.program_id(2) == 0)
    def _():
        acc_ref[...] = jnp.zeros_like(acc_ref)

    acc_ref[...] += jnp.dot(x_ref[...], w_ref[...],
                            preferred_element_type=jnp.float32)

    @pl.when(pl.program_id(2) == pl.num_programs(2) - 1)
    def _():
        y = acc_ref[...] + b_ref[...]
        if activation == "relu":
            y = jnp.maximum(y, 0.0)
        elif activation == "tanh":
            y = jnp.tanh(y)
        o_ref[...] = y.astype(o_ref.dtype)


# ----------------------------------------------------------------------------
# Wrappers (glue in plain JAX under jit, hot path in Pallas)
# ----------------------------------------------------------------------------
def _conv_tile_rows(R, n_quads, ktot, coutp, budget):
    """Pick the pooled-row tile: big enough to amortize per-step overhead,
    within the VMEM budget, and leaving >=2 grid steps for dual-TC chips."""
    per_row = 3 * n_quads * ktot * 2 + 2 * coutp * 2   # 3-deep patch bufs + 2-deep bf16 out
    cap = int((budget * 0.45) // max(per_row, 1))
    tile_r = min(_round_up(R, 16), max(16, (cap // 16) * 16), 8192)
    if R >= 32:                                        # keep both v7x TCs busy
        tile_r = min(tile_r, _round_up(pl.cdiv(R, 2), 16))
    return max(16, tile_r)


def conv_pool(x_nhwc, w_mat_bf16, b2_f32, *, kernel, padding, stride,
              pool_kernel, pool_method="max"):
    """Conv2d(padding, stride) + pool(pool_kernel). NHWC in, NHWC (lane-padded C) out."""
    N, H, W, Cin = x_nhwc.shape
    KH, KW = kernel
    Ktot, Coutp = w_mat_bf16.shape
    assert Ktot == KH * KW * Cin

    # PyTorch size formulas (floor mode).
    Hc = floor((H + 2 * padding - KH) / stride) + 1
    Wc = floor((W + 2 * padding - KW) / stride) + 1
    PH, PW = pool_kernel
    Ho = floor((Hc - PH) / PH) + 1
    Wo = floor((Wc - PW) / PW) + 1
    R = N * Ho * Wo
    n_quads = PH * PW

    budget = _vmem_budget_bytes()
    tile_r = _conv_tile_rows(R, n_quads, Ktot, Coutp, budget)
    R_pad = _round_up(R, tile_r)
    grid_r = R_pad // tile_r

    xp = jnp.pad(x_nhwc.astype(jnp.bfloat16),
                 ((0, 0), (padding, padding), (padding, padding), (0, 0)))

    # Glue (pure data movement): im2col with the conv taps folded into the
    # matmul contraction dim — patches[q, r, (kh*KW + kw)*Cin + c].
    step_h, step_w = PH * stride, PW * stride
    quads = []
    for dh in range(PH):
        for dw in range(PW):
            taps = []
            for kh in range(KH):
                for kw in range(KW):
                    off_h = dh * stride + kh
                    off_w = dw * stride + kw
                    sl = xp[:,
                            off_h: off_h + Ho * step_h: step_h,
                            off_w: off_w + Wo * step_w: step_w,
                            :]                              # (N, Ho, Wo, Cin)
                    taps.append(sl.reshape(R, Cin))
            quads.append(jnp.concatenate(taps, axis=-1))    # (R, Ktot)
    patches = jnp.stack(quads, axis=0)                      # (Q, R, Ktot)
    if R_pad != R:
        patches = jnp.pad(patches, ((0, 0), (0, R_pad - R), (0, 0)))

    # Interleave the quadrants into the row axis, tile-major, so every grid
    # step reads one contiguous (n_quads*tile_r, Ktot) block and the kernel
    # needs a SINGLE dot plus static sublane slices for the pooling reduce.
    patches = patches.reshape(n_quads, grid_r, tile_r, Ktot)
    patches = jnp.transpose(patches, (1, 0, 2, 3)).reshape(
        grid_r * n_quads * tile_r, Ktot)

    block_rows = n_quads * tile_r
    if grid_r >= 3:
        p_spec = pl.BlockSpec((block_rows, Ktot), lambda r: (r, 0),
                              pipeline_mode=pl.Buffered(3))
    else:
        p_spec = pl.BlockSpec((block_rows, Ktot), lambda r: (r, 0))

    cost = pl.CostEstimate(
        flops=2 * n_quads * R_pad * Ktot * Coutp,
        transcendentals=0,
        bytes_accessed=int(patches.size * 2 + w_mat_bf16.size * 2
                           + b2_f32.size * 4 + R_pad * Coutp * 2))

    out = pl.pallas_call(
        functools.partial(_conv_pool_kernel, n_quads=n_quads,
                          pool_method=pool_method),
        out_shape=jax.ShapeDtypeStruct((R_pad, Coutp), jnp.bfloat16),
        grid=(grid_r,),
        in_specs=[p_spec,
                  pl.BlockSpec((Ktot, Coutp), lambda r: (0, 0)),
                  pl.BlockSpec((1, Coutp), lambda r: (0, 0))],
        out_specs=pl.BlockSpec((tile_r, Coutp), lambda r: (r, 0)),
        compiler_params=pltpu.CompilerParams(
            dimension_semantics=("parallel",),
            vmem_limit_bytes=budget),
        cost_estimate=cost,
    )(patches, w_mat_bf16, b2_f32)

    return out[:R].reshape(N, Ho, Wo, Coutp)


def dense(x, w_bf16, b2_f32, activation=None, out_dtype=jnp.bfloat16):
    """(M, K) @ (K, Np) + bias [+ activation]; Np is pre-padded to 128-multiple."""
    M, K = x.shape
    Kw, Np = w_bf16.shape
    assert Kw == K
    if x.dtype != jnp.bfloat16:
        x = x.astype(jnp.bfloat16)
    budget = _vmem_budget_bytes()

    # M (sublane) tiling; keep >=2 row tiles when the batch allows it (v7x).
    tm = min(_round_up(M, 16), 256)
    M_pad = _round_up(M, tm)
    if M_pad // tm == 1 and M_pad > 16:
        tm = _round_up(pl.cdiv(M_pad, 2), 16)
        M_pad = _round_up(M, tm)
    gm = M_pad // tm

    # N (lane) tiling — Np is always a multiple of 128 here (padded at init).
    if Np <= 512 or Np % 128 != 0:
        tn = Np
    elif Np % 512 == 0:
        tn = 512
    elif Np % 256 == 0:
        tn = 256
    else:
        tn = 128
    gn = Np // tn

    # K tiling: single step unless double-buffered blocks would blow the budget.
    limit = int(budget * 0.35)
    per_k = 2 * 2 * (tm + tn)            # 2 buffers x bf16 x (x-row + w-col)
    tk_cap = max(128, (limit // per_k) // 128 * 128)
    if K <= tk_cap or K % 128 != 0:
        tk, gk = K, 1
    else:
        tk = tk_cap
        while K % tk != 0:               # K is a multiple of 128 in this branch
            tk -= 128
        gk = K // tk

    if M_pad != M:
        x = jnp.pad(x, ((0, M_pad - M), (0, 0)))

    out_bytes = jnp.dtype(out_dtype).itemsize
    cost = pl.CostEstimate(
        flops=2 * M_pad * K * Np,
        transcendentals=(M_pad * Np) if activation == "tanh" else 0,
        bytes_accessed=int(x.size * 2 + w_bf16.size * 2
                           + b2_f32.size * 4 + M_pad * Np * out_bytes))

    if gk == 1:
        out = pl.pallas_call(
            functools.partial(_dense_fused_kernel, activation=activation),
            out_shape=jax.ShapeDtypeStruct((M_pad, Np), out_dtype),
            grid=(gm, gn),
            in_specs=[pl.BlockSpec((tm, K), lambda i, j: (i, 0)),
                      pl.BlockSpec((K, tn), lambda i, j: (0, j)),
                      pl.BlockSpec((1, tn), lambda i, j: (0, j))],
            out_specs=pl.BlockSpec((tm, tn), lambda i, j: (i, j)),
            compiler_params=pltpu.CompilerParams(
                dimension_semantics=("parallel", "parallel"),
                vmem_limit_bytes=budget),
            cost_estimate=cost,
        )(x, w_bf16, b2_f32)
    else:
        out = pl.pallas_call(
            functools.partial(_dense_acc_kernel, activation=activation),
            out_shape=jax.ShapeDtypeStruct((M_pad, Np), out_dtype),
            grid=(gm, gn, gk),
            in_specs=[pl.BlockSpec((tm, tk), lambda i, j, k: (i, k)),
                      pl.BlockSpec((tk, tn), lambda i, j, k: (k, j)),
                      pl.BlockSpec((1, tn), lambda i, j, k: (0, j))],
            out_specs=pl.BlockSpec((tm, tn), lambda i, j, k: (i, j)),
            scratch_shapes=[pltpu.VMEM((tm, tn), jnp.float32)],
            compiler_params=pltpu.CompilerParams(
                dimension_semantics=("parallel", "parallel", "arbitrary"),
                vmem_limit_bytes=budget),
            cost_estimate=cost,
        )(x, w_bf16, b2_f32)

    return out[:M]


# ----------------------------------------------------------------------------
# CNNBase (ConvLayers + MLP head) with deterministic parameter init
# ----------------------------------------------------------------------------
class CNNBasePallas:
    def __init__(self, input_size, channels, kernels, paddings, strides,
                 pool_method, pool_size, activate_func, hidden_dims,
                 num_classes, use_layer_norm=False, layer_norm_method=None,
                 use_dropout=False, dropout_ratio=0.0, key=None):
        if channels[0] != input_size[0]:
            raise ValueError("channels[0] must be equal to input_size[0].")
        self.pool_method = pool_method
        self.pool_size = [tuple(p) for p in pool_size]
        self.kernels = [tuple(k) for k in kernels]
        self.paddings = list(paddings)
        self.strides = list(strides)
        self.activate_func = activate_func
        self.num_classes = num_classes

        key = jax.random.PRNGKey(0) if key is None else key

        # ---- conv stack (same floor arithmetic as ConvLayers) ----
        c, w, h = input_size
        self.conv_params = []
        self.conv_cout_true = []
        for idx, (i_c, o_c, k, p, s) in enumerate(
                zip(channels[:-1], channels[1:], kernels, paddings, strides)):
            key, kw_, kb_ = jax.random.split(key, 3)
            scale = 1.0 / jnp.sqrt(float(i_c * k[0] * k[1]))
            W_conv = scale * jax.random.normal(kw_, (o_c, i_c, k[0], k[1]),
                                               jnp.float32)
            b_conv = scale * jax.random.normal(kb_, (o_c,), jnp.float32)
            o_cp = _round_up(o_c, 128)        # lane-dense conv output channels
            # Tap-folded (KH*KW*Cin, Coutp) bf16 weight, lane-padded N.
            w4 = jnp.transpose(W_conv, (2, 3, 1, 0))          # (KH,KW,Cin,Cout)
            w4 = jnp.pad(w4, ((0, 0), (0, 0), (0, 0), (0, o_cp - o_c)))
            w_mat = w4.reshape(k[0] * k[1] * i_c, o_cp).astype(jnp.bfloat16)
            b2 = jnp.pad(b_conv, (0, o_cp - o_c)).reshape(1, o_cp).astype(jnp.float32)
            self.conv_params.append((w_mat, b2))
            self.conv_cout_true.append(o_c)
            c = o_c
            w = floor((w + 2 * p - k[0]) / s) + 1
            h = floor((h + 2 * p - k[1]) / s) + 1
            pk = pool_size[idx]
            w = floor((w - pk[0]) / pk[0]) + 1
            h = floor((h - pk[1]) / pk[1]) + 1
        self.out_channel, self.out_w, self.out_h = c, w, h
        self.out_channel_pad = _round_up(c, 128)
        self.mlp_input_dim = c * w * h
        feat_dim_pad = self.out_w * self.out_h * self.out_channel_pad

        # ---- MLP head: Linear(+act) per hidden dim, then Linear -> classes --
        dims = [self.mlp_input_dim] + list(hidden_dims) + [num_classes]
        self.mlp_params = []
        in_dim_pad = feat_dim_pad
        for li, (d_in, d_out) in enumerate(zip(dims[:-1], dims[1:])):
            key, kw_, kb_ = jax.random.split(key, 3)
            scale = 1.0 / jnp.sqrt(float(d_in))
            W_fc = scale * jax.random.normal(kw_, (d_in, d_out), jnp.float32)
            b_fc = scale * jax.random.normal(kb_, (d_out,), jnp.float32)
            d_out_pad = _round_up(d_out, 128)
            if li == 0:
                # Fold the NCHW-flatten permutation AND the channel padding of
                # the last conv layer into the first FC weight (no runtime
                # transpose of the feature map, lane-dense features).
                D1, D2, CC = jnp.meshgrid(jnp.arange(self.out_w),
                                          jnp.arange(self.out_h),
                                          jnp.arange(self.out_channel),
                                          indexing="ij")
                torch_rows = (CC * (self.out_w * self.out_h)
                              + D1 * self.out_h + D2).reshape(-1)
                Wp = W_fc[torch_rows, :].reshape(self.out_w * self.out_h,
                                                 self.out_channel, d_out)
                Wp = jnp.pad(Wp, ((0, 0),
                                  (0, self.out_channel_pad - self.out_channel),
                                  (0, 0)))
                Wp = Wp.reshape(feat_dim_pad, d_out)
            else:
                Wp = jnp.pad(W_fc, ((0, in_dim_pad - d_in), (0, 0)))
            Wp = jnp.pad(Wp, ((0, 0), (0, d_out_pad - d_out))).astype(jnp.bfloat16)
            bp = jnp.pad(b_fc, (0, d_out_pad - d_out)).reshape(1, d_out_pad)
            self.mlp_params.append((Wp, bp.astype(jnp.float32)))
            in_dim_pad = d_out_pad

        # One jit over the whole forward so glue + pallas_calls fuse/schedule
        # together and weight constants are staged once.
        self._fwd = jax.jit(self._forward)

    def _forward(self, x_nchw):
        # NCHW -> NHWC once, at the top of the network; bf16 activations.
        x = jnp.transpose(x_nchw, (0, 2, 3, 1)).astype(jnp.bfloat16)
        n_conv = len(self.conv_params)
        for idx, (w_mat, b2) in enumerate(self.conv_params):
            x = conv_pool(x, w_mat, b2,
                          kernel=self.kernels[idx],
                          padding=self.paddings[idx],
                          stride=self.strides[idx],
                          pool_kernel=self.pool_size[idx],
                          pool_method=self.pool_method)
            if idx + 1 < n_conv:
                # Strip channel padding before the next layer's im2col so the
                # duplicated patch stream only carries real channels.
                x = x[..., :self.conv_cout_true[idx]]
        N = x.shape[0]
        feat = x.reshape(N, -1)        # (N, out_w*out_h*out_channel_pad), bf16

        h = feat
        for (Wp, bp) in self.mlp_params[:-1]:
            h = dense(h, Wp, bp, activation=self.activate_func,
                      out_dtype=jnp.bfloat16)
        W_out, b_out = self.mlp_params[-1]
        out = dense(h, W_out, b_out, activation=None, out_dtype=jnp.float32)
        return out[:, :self.num_classes]   # drop class-logit lane padding once

    def __call__(self, x_nchw):
        return self._fwd(x_nchw)


# ----------------------------------------------------------------------------
if __name__ == "__main__":
    root = jax.random.PRNGKey(0)
    k_x, k_params = jax.random.split(root)

    # Small shapes consistent with the module: batch=2, channels=4, spatial=16.
    x = jax.random.normal(k_x, (2, 4, 16, 16), jnp.float32)   # NCHW

    model = CNNBasePallas(
        input_size=(4, 16, 16),
        channels=[4, 8],
        kernels=[(3, 3)],
        paddings=[1],
        strides=[1],
        pool_method="max",
        pool_size=[(2, 2)],
        activate_func="relu",
        hidden_dims=[32],
        num_classes=10,
        use_layer_norm=False,
        layer_norm_method=None,
        use_dropout=False,
        dropout_ratio=0.0,
        key=k_params,
    )

    out = model(x)
    out = jax.block_until_ready(out)
    assert out.shape == (2, 10), out.shape
    assert bool(jnp.all(jnp.isfinite(out)))
    print("KERNEL_OK")
</pallas_src>

<mosaic_0001>
module attributes {stable_mosaic.version = 11 : i64} {
  func.func @_conv_pool_kernel(%arg0: i32, %arg1: memref<256x36xbf16, #tpu.memory_space<vmem>>, %arg2: memref<36x128xbf16, #tpu.memory_space<vmem>>, %arg3: memref<1x128xf32, #tpu.memory_space<vmem>>, %arg4: memref<64x128xbf16, #tpu.memory_space<vmem>>) attributes {dimension_semantics = [#tpu.dimension_semantics<parallel>], iteration_bounds = array<i64: 2>, scalar_prefetch = 0 : i64, scratch_operands = 0 : i64, tpu.core_type = #tpu.core_type<tc>, window_params = [{transform_indices = @transform_0, window_bounds = array<i64: 256, 36>}, {pipeline_mode = #tpu.pipeline_mode<synchronous>, transform_indices = @transform_1, window_bounds = array<i64: 36, 128>}, {pipeline_mode = #tpu.pipeline_mode<synchronous>, transform_indices = @transform_2, window_bounds = array<i64: 1, 128>}, {transform_indices = @transform_3, window_bounds = array<i64: 64, 128>}]} {
    %c0 = arith.constant 0 : index
    %c0_0 = arith.constant 0 : index
    %0 = vector.load %arg1[%c0, %c0_0] : memref<256x36xbf16, #tpu.memory_space<vmem>>, vector<256x36xbf16>
    %c0_1 = arith.constant 0 : index
    %c0_2 = arith.constant 0 : index
    %1 = vector.load %arg2[%c0_1, %c0_2] : memref<36x128xbf16, #tpu.memory_space<vmem>>, vector<36x128xbf16>
    %cst = arith.constant dense<0.000000e+00> : vector<256x128xf32>
    %2 = tpu.matmul %0, %1, %cst {dimension_numbers = #tpu.dot_dimension_numbers<[1], [0], [0], [1], [0, 0, 1, 1], [], []>} : vector<256x36xbf16>, vector<36x128xbf16>, vector<256x128xf32> -> vector<256x128xf32>
    %3 = vector.extract_strided_slice %2 {offsets = [0, 0], sizes = [64, 128], strides = [1, 1]} : vector<256x128xf32> to vector<64x128xf32>
    %4 = vector.extract_strided_slice %2 {offsets = [64, 0], sizes = [64, 128], strides = [1, 1]} : vector<256x128xf32> to vector<64x128xf32>
    %5 = arith.maximumf %3, %4 : vector<64x128xf32>
    %6 = vector.extract_strided_slice %2 {offsets = [128, 0], sizes = [64, 128], strides = [1, 1]} : vector<256x128xf32> to vector<64x128xf32>
    %7 = arith.maximumf %5, %6 : vector<64x128xf32>
    %8 = vector.extract_strided_slice %2 {offsets = [192, 0], sizes = [64, 128], strides = [1, 1]} : vector<256x128xf32> to vector<64x128xf32>
    %9 = arith.maximumf %7, %8 : vector<64x128xf32>
    %c0_3 = arith.constant 0 : index
    %c0_4 = arith.constant 0 : index
    %10 = vector.load %arg3[%c0_3, %c0_4] : memref<1x128xf32, #tpu.memory_space<vmem>>, vector<1x128xf32>
    %11 = vector.broadcast %10 : vector<1x128xf32> to vector<64x128xf32>
    %12 = arith.addf %9, %11 : vector<64x128xf32>
    %13 = arith.truncf %12 : vector<64x128xf32> to vector<64x128xbf16>
    %c0_5 = arith.constant 0 : index
    %c0_6 = arith.constant 0 : index
    %14 = vector.load %arg4[%c0_5, %c0_6] : memref<64x128xbf16, #tpu.memory_space<vmem>>, vector<64x128xbf16>
    tpu.vector_store %arg4[%c0_5, %c0_6], %13 {strides = array<i32>} : memref<64x128xbf16, #tpu.memory_space<vmem>>, vector<64x128xbf16>,
    return
  }
  func.func @transform_0(%arg0: i32) -> (i32, i32) {
    %c0_i32 = arith.constant 0 : i32
    %c0_i32_0 = arith.constant 0 : i32
    return %arg0, %c0_i32 : i32, i32
  }
  func.func @transform_1(%arg0: i32) -> (i32, i32) {
    %c0_i32 = arith.constant 0 : i32
    %c0_i32_0 = arith.constant 0 : i32
    %c0_i32_1 = arith.constant 0 : i32
    return %c0_i32, %c0_i32_0 : i32, i32
  }
  func.func @transform_2(%arg0: i32) -> (i32, i32) {
    %c0_i32 = arith.constant 0 : i32
    %c0_i32_0 = arith.constant 0 : i32
    %c0_i32_1 = arith.constant 0 : i32
    return %c0_i32, %c0_i32_0 : i32, i32
  }
  func.func @transform_3(%arg0: i32) -> (i32, i32) {
    %c0_i32 = arith.constant 0 : i32
    %c0_i32_0 = arith.constant 0 : i32
    return %arg0, %c0_i32 : i32, i32
  }
}

module attributes {stable_mosaic.version = 11 : i64} {
  func.func @_dense_fused_kernel(%arg0: i32, %arg1: i32, %arg2: memref<16x8192xbf16, #tpu.memory_space<vmem>>, %arg3: memref<8192x128xbf16, #tpu.memory_space<vmem>>, %arg4: memref<1x128xf32, #tpu.memory_space<vmem>>, %arg5: memref<16x128xbf16, #tpu.memory_space<vmem>>) attributes {dimension_semantics = [#tpu.dimension_semantics<parallel>, #tpu.dimension_semantics<parallel>], iteration_bounds = array<i64: 1, 1>, scalar_prefetch = 0 : i64, scratch_operands = 0 : i64, tpu.core_type = #tpu.core_type<tc>, window_params = [{transform_indices = @transform_0, window_bounds = array<i64: 16, 8192>}, {transform_indices = @transform_1, window_bounds = array<i64: 8192, 128>}, {transform_indices = @transform_2, window_bounds = array<i64: 1, 128>}, {transform_indices = @transform_3, window_bounds = array<i64: 16, 128>}]} {
    %c0 = arith.constant 0 : index
    %c0_0 = arith.constant 0 : index
    %0 = vector.load %arg2[%c0, %c0_0] : memref<16x8192xbf16, #tpu.memory_space<vmem>>, vector<16x8192xbf16>
    %c0_1 = arith.constant 0 : index
    %c0_2 = arith.constant 0 : index
    %1 = vector.load %arg3[%c0_1, %c0_2] : memref<8192x128xbf16, #tpu.memory_space<vmem>>, vector<8192x128xbf16>
    %cst = arith.constant dense<0.000000e+00> : vector<16x128xf32>
    %2 = tpu.matmul %0, %1, %cst {dimension_numbers = #tpu.dot_dimension_numbers<[1], [0], [0], [1], [0, 0, 1, 1], [], []>} : vector<16x8192xbf16>, vector<8192x128xbf16>, vector<16x128xf32> -> vector<16x128xf32>
    %c0_3 = arith.constant 0 : index
    %c0_4 = arith.constant 0 : index
    %3 = vector.load %arg4[%c0_3, %c0_4] : memref<1x128xf32, #tpu.memory_space<vmem>>, vector<1x128xf32>
    %4 = vector.broadcast %3 : vector<1x128xf32> to vector<16x128xf32>
    %5 = arith.addf %2, %4 : vector<16x128xf32>
    %cst_5 = arith.constant 0.000000e+00 : f32
    %6 = vector.broadcast %cst_5 : f32 to vector<16x128xf32>
    %7 = arith.maximumf %5, %6 : vector<16x128xf32>
    %8 = arith.truncf %7 : vector<16x128xf32> to vector<16x128xbf16>
    %c0_6 = arith.constant 0 : index
    %c0_7 = arith.constant 0 : index
    %9 = vector.load %arg5[%c0_6, %c0_7] : memref<16x128xbf16, #tpu.memory_space<vmem>>, vector<16x128xbf16>
    tpu.vector_store %arg5[%c0_6, %c0_7], %8 {strides = array<i32>} : memref<16x128xbf16, #tpu.memory_space<vmem>>, vector<16x128xbf16>,
    return
  }
  func.func @transform_0(%arg0: i32, %arg1: i32) -> (i32, i32) {
    %c0_i32 = arith.constant 0 : i32
    %c0_i32_0 = arith.constant 0 : i32
    return %arg0, %c0_i32 : i32, i32
  }
  func.func @transform_1(%arg0: i32, %arg1: i32) -> (i32, i32) {
    %c0_i32 = arith.constant 0 : i32
    %c0_i32_0 = arith.constant 0 : i32
    return %c0_i32, %arg1 : i32, i32
  }
  func.func @transform_2(%arg0: i32, %arg1: i32) -> (i32, i32) {
    %c0_i32 = arith.constant 0 : i32
    %c0_i32_0 = arith.constant 0 : i32
    return %c0_i32, %arg1 : i32, i32
  }
  func.func @transform_3(%arg0: i32, %arg1: i32) -> (i32, i32) {
    %c0_i32 = arith.constant 0 : i32
    return %arg0, %arg1 : i32, i32
  }
}

module attributes {stable_mosaic.version = 11 : i64} {
  func.func @_dense_fused_kernel(%arg0: i32, %arg1: i32, %arg2: memref<16x128xbf16, #tpu.memory_space<vmem>>, %arg3: memref<128x128xbf16, #tpu.memory_space<vmem>>, %arg4: memref<1x128xf32, #tpu.memory_space<vmem>>, %arg5: memref<16x128xf32, #tpu.memory_space<vmem>>) attributes {dimension_semantics = [#tpu.dimension_semantics<parallel>, #tpu.dimension_semantics<parallel>], iteration_bounds = array<i64: 1, 1>, scalar_prefetch = 0 : i64, scratch_operands = 0 : i64, tpu.core_type = #tpu.core_type<tc>, window_params = [{transform_indices = @transform_0, window_bounds = array<i64: 16, 128>}, {transform_indices = @transform_1, window_bounds = array<i64: 128, 128>}, {transform_indices = @transform_2, window_bounds = array<i64: 1, 128>}, {transform_indices = @transform_3, window_bounds = array<i64: 16, 128>}]} {
    %c0 = arith.constant 0 : index
    %c0_0 = arith.constant 0 : index
    %0 = vector.load %arg2[%c0, %c0_0] : memref<16x128xbf16, #tpu.memory_space<vmem>>, vector<16x128xbf16>
    %c0_1 = arith.constant 0 : index
    %c0_2 = arith.constant 0 : index
    %1 = vector.load %arg3[%c0_1, %c0_2] : memref<128x128xbf16, #tpu.memory_space<vmem>>, vector<128x128xbf16>
    %cst = arith.constant dense<0.000000e+00> : vector<16x128xf32>
    %2 = tpu.matmul %0, %1, %cst {dimension_numbers = #tpu.dot_dimension_numbers<[1], [0], [0], [1], [0, 0, 1, 1], [], []>} : vector<16x128xbf16>, vector<128x128xbf16>, vector<16x128xf32> -> vector<16x128xf32>
    %c0_3 = arith.constant 0 : index
    %c0_4 = arith.constant 0 : index
    %3 = vector.load %arg4[%c0_3, %c0_4] : memref<1x128xf32, #tpu.memory_space<vmem>>, vector<1x128xf32>
    %4 = vector.broadcast %3 : vector<1x128xf32> to vector<16x128xf32>
    %5 = arith.addf %2, %4 : vector<16x128xf32>
    %c0_5 = arith.constant 0 : index
    %c0_6 = arith.constant 0 : index
    %6 = vector.load %arg5[%c0_5, %c0_6] : memref<16x128xf32, #tpu.memory_space<vmem>>, vector<16x128xf32>
    tpu.vector_store %arg5[%c0_5, %c0_6], %5 {strides = array<i32>} : memref<16x128xf32, #tpu.memory_space<vmem>>, vector<16x128xf32>,
    return
  }
  func.func @transform_0(%arg0: i32, %arg1: i32) -> (i32, i32) {
    %c0_i32 = arith.constant 0 : i32
    %c0_i32_0 = arith.constant 0 : i32
    return %arg0, %c0_i32 : i32, i32
  }
  func.func @transform_1(%arg0: i32, %arg1: i32) -> (i32, i32) {
    %c0_i32 = arith.constant 0 : i32
    %c0_i32_0 = arith.constant 0 : i32
    return %c0_i32, %arg1 : i32, i32
  }
  func.func @transform_2(%arg0: i32, %arg1: i32) -> (i32, i32) {
    %c0_i32 = arith.constant 0 : i32
    %c0_i32_0 = arith.constant 0 : i32
    return %c0_i32, %arg1 : i32, i32
  }
  func.func @transform_3(%arg0: i32, %arg1: i32) -> (i32, i32) {
    %c0_i32 = arith.constant 0 : i32
    return %arg0, %arg1 : i32, i32
  }
}

</mosaic_0001>

<bundles_post_ra>
// kernel: _forward.5
= control target key start
LH: loop header
LB: loop body
LE: loop exit
PB: predicated region body
PF: predicated region fallthrough
CT: control target
= control target key end

     0   :  { %v191_v0 = vmov 0.0   ;;  %vm192_vm0 = vmmov 0   ;;  %s249_s1 = inlined_call_operand.vmem [shape: bf16[128,128], index: 1, kind: input, shape index: {}]   ;;  %s250_s0 = inlined_call_operand.vmem [shape: bf16[16,128], index: 0, kind: input, shape index: {}]   ;;  %s251_s2 = inlined_call_operand.vmem [shape: f32[1,128], index: 2, kind: input, shape index: {}]   ;;  %s252_s3 = inlined_call_operand.vmem [shape: f32[16,128], index: 3, kind: output, shape index: {}]  }
   0x1   :  { %160 = vmatprep.subr.bf16.mxu0 %v191_v0  ;;  %v182_v1 = vld [vmem:[%s249_s1 + $0x38] sm:$0xff]   ;;  %176 = vmatprep.mubr.msk.bf16.mxu0 %vm192_vm0, %v191_v0  ;;  %v183_v2 = vld [vmem:[%s249_s1 + $0x30] sm:$0xff]   ;;  %v184_v3 = vld [vmem:[%s249_s1 + $0x28] sm:$0xff]  }
   0x2   :  { %161 = vmatpush3.bf16.msra.mxu0 %v182_v1  ;;  %v185_v4 = vld [vmem:[%s249_s1 + $0x20] sm:$0xff]   ;;  %v186_v5 = vld [vmem:[%s249_s1 + $0x18] sm:$0xff]   ;;  %v187_v6 = vld [vmem:[%s249_s1 + $0x10] sm:$0xff]  }
   0x3   :  { %162 = vmatprep.subr.bf16.mxu0 %v191_v0  ;;  %v188_v7 = vld [vmem:[%s249_s1 + $0x8] sm:$0xff]   ;;  %v189_v8 = vld [vmem:[%s249_s1] sm:$0xff]  }
   0x4   :  { %v190_v9 = vld [vmem:[%s250_s0] sm:$0xff]  }
   0x5   :  { %v141_v10 = vld [vmem:[%s251_s2] ss:$0 sm:$0xff] }
   0x6   :  { %163 = vmatpush3.bf16.msra.mxu0 %v183_v2 }
   0x7   :  { %164 = vmatprep.subr.bf16.mxu0 %v191_v0 }
   0xa   :  { %165 = vmatpush3.bf16.msra.mxu0 %v184_v3 }
   0xb   :  { %166 = vmatprep.subr.bf16.mxu0 %v191_v0 }
   0xe   :  { %167 = vmatpush3.bf16.msra.mxu0 %v185_v4 }
   0xf   :  { %168 = vmatprep.subr.bf16.mxu0 %v191_v0 }
  0x12   :  { %169 = vmatpush3.bf16.msra.mxu0 %v186_v5 }
  0x13   :  { %170 = vmatprep.subr.bf16.mxu0 %v191_v0 }
  0x16   :  { %171 = vmatpush3.bf16.msra.mxu0 %v187_v6 }
  0x17   :  { %172 = vmatprep.subr.bf16.mxu0 %v191_v0 }
  0x1a   :  { %173 = vmatpush3.bf16.msra.mxu0 %v188_v7 }
  0x1b   :  { %174 = vmatprep.subr.bf16.mxu0 %v191_v0 }
  0x1e   :  { %175 = vmatpush3.bf16.msra.mxu0 %v189_v8 }
  0x21   :  { %177 = vmatmul.mubr.bf16.vlgmr.msra.gmra.mxu0 %v190_v9 }
  0xe1   :  { %v128_v11 = vpop.f32.mrf.mxu0 }
  0xe2   :  { %v129_v12 = vadd.f32 %v141_v10, %v128_v11 }
  0xe3   :  { %v178_v13 = vpop.f32.mrf.mxu0 }
  0xe4   :  { %135 = vst [vmem:[%s252_s3] sm:$0xff] %v129_v12 }
  0xe5   :  { %v131_v14 = vpop.f32.mrf.mxu0 }
  0xe6   :  { %v132_v15 = vadd.f32 %v141_v10, %v131_v14 }
  0xe7   :  { %v179_v16 = vpop.f32.mrf.mxu0 }
  0xe8   :  { %136 = vst [vmem:[%s252_s3 + $0x8] sm:$0xff] %v132_v15 }

// kernel: _forward.3
= control target key start
LH: loop header
LB: loop body
LE: loop exit
PB: predicated region body
PF: predicated region fallthrough
CT: control target
= control target key end

     0   :  { %s862_s12 = smov 0   ;;  %s929_s0 = inlined_call_operand.vmem [shape: bf16[512,36], index: 0, kind: input, shape index: {}]   ;;  %s930_s1 = inlined_call_operand.vmem [shape: bf16[36,128], index: 1, kind: input, shape index: {}]   ;;  %s931_s2 = inlined_call_operand.vmem [shape: f32[1,128], index: 2, kind: input, shape index: {}]   ;;  %s932_s3 = inlined_call_operand.vmem [shape: bf16[128,128], index: 3, kind: output, shape index: {}]  }
   0x1 LB: > { %s656_s13 = sadd.s32 4294967295, %s840_s12   ;;  %p660_p0 = scmp.ge.s32.totalorder %s840_s12, 1  ;;  %s840_s12 = sphi %s862_s12, %s13_s12  }
   0x2   : > { %p138_p1 = scmp.lt.s32.totalorder %s840_s12, 3 }
   0x4   : > { %p139_p2 = pnand %p660_p0, %p138_p1 }
   0x5   : > { %s661_s18 = sshll.u32 (!%p139_p2), %s656_s13, 5  ;;  %s663_s25 = sshll.u32 (!%p139_p2), %s656_s13, 3 }
   0x6   : > { %142 = sbr.rel (%p139_p2) target bundleno = 258 (0x102), region = 32  ;;  %p163_p3 = scmp.lt.s32.totalorder (!%p139_p2), %s661_s18, 63 }
   0x7   : > { %p169_p4 = scmp.lt.s32.totalorder (!%p139_p2), %s663_s25, 15 }
   0xb   : > { %v815_v0 = vld [vmem:[%s930_s1 + $0x10] ss:$0 sps:$4 sm:$0x33]   ;;  %vm356_vm0 = vcmask 1041408   ;;  %v816_v1 = vld [vmem:[%s930_s1 + $0x8] sm:$0xff]   ;;  %v817_v3 = vld [vmem:[%s930_s1] sm:$0xff]  }
   0xc   : > { %805 = vmatprep.subr.msk.bf16.mxu0 %vm356_vm0, %v815_v0  ;;  %806 = vmatprep.subr.msk.bf16.mxu1 %vm356_vm0, %v815_v0  ;;  %v358_v2 = vsel %vm356_vm0, %v815_v0, 0  ;;  %s934_s18 = smov (!%p163_p3, %s661_s18), 63  ;;  %vm307_vm1 = vcmask 293888   ;;  %s936_s25 = smov (!%p169_p4, %s663_s25), 15  ;;  %v700_v52 = vld [vmem:[%s931_s2] ss:$0 sm:$0xff] }
   0xd   : > { %762 = vmatpush3.bf16.msra.mxu0 %v358_v2  ;;  %802 = vmatpush3.bf16.msra.mxu1 %v358_v2  ;;  %s662_s21 = sshll.u32 %s934_s18, 2  ;;  %s664_s28 = sshll.u32 %s936_s25, 2 }
   0xe   : > { %763 = vmatprep.subr.bf16.mxu0 %v816_v1  ;;  %800 = vmatprep.subr.bf16.mxu1 %v816_v1  ;;  %s884_s24 = scalar_lea.vmem %s929_s0, %s662_s21  ;;  %s172_s4 = scalar_lea.vmem %s932_s3, %s664_s28 }
   0xf   : > { %v818_v4 = vld [vmem:[%s884_s24] sm:$0xff]   ;;  %v820_v6 = vld [vmem:[%s884_s24 + $0x8] sm:$0xff]   ;;  %v822_v8 = vld [vmem:[%s884_s24 + $0x10] sm:$0xff]  }
  0x10   : > { %v819_v5 = vld [vmem:[%s884_s24 + $0x40] sm:$0xff]   ;;  %767 = vmatprep.mubr.msk.bf16.mxu0 %vm307_vm1, %v818_v4  ;;  %v821_v7 = vld [vmem:[%s884_s24 + $0x48] sm:$0xff]   ;;  %v823_v9 = vld [vmem:[%s884_s24 + $0x50] sm:$0xff]  }
  0x11   : > { %764 = vmatpush3.bf16.msra.mxu0 %v816_v1  ;;  %803 = vmatpush3.bf16.msra.mxu1 %v816_v1  ;;  %v824_v10 = vld [vmem:[%s884_s24 + $0x18] sm:$0xff]   ;;  %v826_v12 = vld [vmem:[%s884_s24 + $0x20] sm:$0xff]   ;;  %v828_v14 = vld [vmem:[%s884_s24 + $0x28] sm:$0xff]  }
  0x12   : > { %765 = vmatprep.subr.bf16.mxu0 %v817_v3  ;;  %801 = vmatprep.subr.bf16.mxu1 %v817_v3  ;;  %v825_v11 = vld [vmem:[%s884_s24 + $0x58] sm:$0xff]   ;;  %v827_v13 = vld [vmem:[%s884_s24 + $0x60] sm:$0xff]   ;;  %v829_v15 = vld [vmem:[%s884_s24 + $0x68] sm:$0xff]  }
  0x13   : > { %783 = vmatprep.mubr.msk.bf16.mxu1 %vm307_vm1, %v819_v5  ;;  %v830_v16 = vld [vmem:[%s884_s24 + $0x30] sm:$0xff]   ;;  %v832_v18 = vld [vmem:[%s884_s24 + $0x38] sm:$0xff]  }
  0x14   : > { %v831_v17 = vld [vmem:[%s884_s24 + $0x70] sm:$0xff]   ;;  %v833_v19 = vld [vmem:[%s884_s24 + $0x78] sm:$0xff]  }
  0x15   : > { %766 = vmatpush3.bf16.msra.mxu0 %v817_v3  ;;  %804 = vmatpush3.bf16.msra.mxu1 %v817_v3 }
  0x18   : > { %768 = vmatmul.mubr.msk.bf16.vlgmr.msra.gmra.mxu0 %vm307_vm1, %v820_v6  ;;  %784 = vmatmul.mubr.msk.bf16.vlgmr.msra.gmra.mxu1 %vm307_vm1, %v821_v7 }
  0x19   : > { %771 = vmatprep.mubr.msk.bf16.mxu0 %vm307_vm1, %v822_v8  ;;  %787 = vmatprep.mubr.msk.bf16.mxu1 %vm307_vm1, %v823_v9 }
  0x20   : > { %772 = vmatmul.mubr.msk.bf16.gmra.mxu0 %vm307_vm1, %v824_v10  ;;  %788 = vmatmul.mubr.msk.bf16.gmra.mxu1 %vm307_vm1, %v825_v11 }
  0x21   : > { %775 = vmatprep.mubr.msk.bf16.mxu0 %vm307_vm1, %v826_v12  ;;  %791 = vmatprep.mubr.msk.bf16.mxu1 %vm307_vm1, %v827_v13 }
  0x28   : > { %776 = vmatmul.mubr.msk.bf16.gmra.mxu0 %vm307_vm1, %v828_v14  ;;  %792 = vmatmul.mubr.msk.bf16.gmra.mxu1 %vm307_vm1, %v829_v15 }
  0x29   : > { %779 = vmatprep.mubr.msk.bf16.mxu0 %vm307_vm1, %v830_v16  ;;  %795 = vmatprep.mubr.msk.bf16.mxu1 %vm307_vm1, %v831_v17 }
  0x30   : > { %780 = vmatmul.mubr.msk.bf16.gmra.mxu0 %vm307_vm1, %v832_v18  ;;  %796 = vmatmul.mubr.msk.bf16.gmra.mxu1 %vm307_vm1, %v833_v19 }
  0xd8   : > { %v769_v20 = vpop.f32.mrf.mxu0  ;;  %v785_v21 = vpop.f32.mrf.mxu1 }
  0xda   : > { %v394_v22 = vpop.f32.mrf.mxu0  ;;  %v458_v23 = vpop.f32.mrf.mxu1 }
  0xdc   : > { %v770_v24 = vpop.f32.mrf.mxu0  ;;  %v786_v25 = vpop.f32.mrf.mxu1 }
  0xde   : > { %v397_v26 = vpop.f32.mrf.mxu0  ;;  %v461_v27 = vpop.f32.mrf.mxu1 }
  0xe0   : > { %v773_v28 = vpop.f32.mrf.mxu0  ;;  %v789_v29 = vpop.f32.mrf.mxu1 }
  0xe2   : > { %v410_v30 = vpop.f32.mrf.mxu0  ;;  %v474_v31 = vpop.f32.mrf.mxu1 }
  0xe4   : > { %v774_v32 = vpop.f32.mrf.mxu0  ;;  %v790_v33 = vpop.f32.mrf.mxu1 }
  0xe6   : > { %v413_v34 = vpop.f32.mrf.mxu0  ;;  %v477_v35 = vpop.f32.mrf.mxu1 }
  0xe8   : > { %v777_v36 = vpop.f32.mrf.mxu0  ;;  %v793_v37 = vpop.f32.mrf.mxu1 }
  0xe9   : > { %v523_v38 = vmax.f32 %v769_v20, %v777_v36 }
  0xea   : > { %v426_v39 = vpop.f32.mrf.mxu0  ;;  %v490_v40 = vpop.f32.mrf.mxu1 }
  0xeb   : > { %v531_v41 = vmax.f32 %v523_v38, %v785_v21  ;;  %v521_v42 = vmax.f32 %v394_v22, %v426_v39 }
  0xec   : > { %v778_v43 = vpop.f32.mrf.mxu0  ;;  %v794_v44 = vpop.f32.mrf.mxu1 }
  0xed   : > { %v529_v45 = vmax.f32 %v521_v42, %v458_v23  ;;  %v524_v46 = vmax.f32 %v770_v24, %v778_v43  ;;  %v539_v49 = vmax.f32 %v531_v41, %v793_v37 }
  0xee   : > { %v429_v47 = vpop.f32.mrf.mxu0  ;;  %v493_v48 = vpop.f32.mrf.mxu1 }
  0xef   : > { %v532_v50 = vmax.f32 %v524_v46, %v786_v25  ;;  %v522_v51 = vmax.f32 %v397_v26, %v429_v47  ;;  %v537_v55 = vmax.f32 %v529_v45, %v490_v40  ;;  %v554_v61 = vadd.f32 %v700_v52, %v539_v49 }
  0xf0   : > { %v781_v53 = vpop.f32.mrf.mxu0  ;;  %v797_v54 = vpop.f32.mrf.mxu1 }
  0xf1   : > { %v540_v56 = vmax.f32 %v532_v50, %v794_v44  ;;  %v530_v57 = vmax.f32 %v522_v51, %v461_v27  ;;  %v527_v58 = vmax.f32 %v773_v28, %v781_v53  ;;  %v552_v3 = vadd.f32 %v700_v52, %v537_v55 }
  0xf2   : > { %v442_v59 = vpop.f32.mrf.mxu0  ;;  %v506_v60 = vpop.f32.mrf.mxu1 }
  0xf3   : > { %v555_v62 = vadd.f32 %v700_v52, %v540_v56  ;;  %v538_v63 = vmax.f32 %v530_v57, %v493_v48  ;;  %v525_v0 = vmax.f32 %v410_v30, %v442_v59  ;;  %v535_v1 = vmax.f32 %v527_v58, %v789_v29 }
  0xf4   : > { %v782_v2 = vpop.f32.mrf.mxu0  ;;  %v798_v8 = vpop.f32.mrf.mxu1 }
  0xf5   : > { %v727_v4 = vpack.c.bf16 %v555_v62, %v554_v61  ;;  %v553_v5 = vadd.f32 %v700_v52, %v538_v63  ;;  %v533_v6 = vmax.f32 %v525_v0, %v474_v31  ;;  %v528_v7 = vmax.f32 %v774_v32, %v782_v2 }
  0xf6   : > { %v445_v9 = vpop.f32.mrf.mxu0  ;;  %v543_v12 = vmax.f32 %v535_v1, %v797_v54  ;;  %v509_v17 = vpop.f32.mrf.mxu1 }
  0xf7   : > { %739 = vst [vmem:[%s172_s4 + $0x8] sm:$0xff] %v727_v4   ;;  %v722_v10 = vpack.c.bf16 %v553_v5, %v552_v3  ;;  %v526_v11 = vmax.f32 %v413_v34, %v445_v9  ;;  %v536_v13 = vmax.f32 %v528_v7, %v790_v33  ;;  %v541_v14 = vmax.f32 %v533_v6, %v506_v60 }
  0xf8   : > { %v558_v19 = vadd.f32 %v700_v52, %v543_v12 }
  0xf9   : > { %723 = vst [vmem:[%s172_s4] sm:$0xff] %v722_v10   ;;  %v534_v15 = vmax.f32 %v526_v11, %v477_v35  ;;  %v544_v16 = vmax.f32 %v536_v13, %v798_v8  ;;  %v556_v21 = vadd.f32 %v700_v52, %v541_v14 }
  0xfb   : > { %v542_v18 = vmax.f32 %v534_v15, %v509_v17  ;;  %v559_v20 = vadd.f32 %v700_v52, %v544_v16 }
  0xfd   : > { %v557_v22 = vadd.f32 %v700_v52, %v542_v18  ;;  %v737_v23 = vpack.c.bf16 %v559_v20, %v558_v19 }
  0xff   : > { %v732_v24 = vpack.c.bf16 %v557_v22, %v556_v21  ;;  %741 = vst [vmem:[%s172_s4 + $0x18] sm:$0xff] %v737_v23  }
 0x101   : > { %740 = vst [vmem:[%s172_s4 + $0x10] sm:$0xff] %v732_v24  }
 0x102 PF: > { %s13_s12 = sadd.s32 1, %s840_s12  }
 0x103   : > { %p10_p5 = scmp.ge.s32.totalorder %s13_s12, 4  }
 0x105   :  { %12 = sbr.rel (!%p10_p5) target bundleno = 1 (0x1), region = 62 }

// kernel: _forward.4
= control target key start
LH: loop header
LB: loop body
LE: loop exit
PB: predicated region body
PF: predicated region fallthrough
CT: control target
= control target key end

     0   :  { %s9651_s1 = inlined_call_operand.vmem [shape: bf16[8192,128], index: 1, kind: input, shape index: {}]   ;;  %s9652_s0 = inlined_call_operand.vmem [shape: bf16[16,8192], index: 0, kind: input, shape index: {}]   ;;  %s9653_s2 = inlined_call_operand.vmem [shape: f32[1,128], index: 2, kind: input, shape index: {}]   ;;  %s9654_s3 = inlined_call_operand.vmem [shape: bf16[16,128], index: 3, kind: output, shape index: {}]  }
   0x1   :  { %v7120_v0 = vld [vmem:[%s9651_s1 + $0x78] sm:$0xff]   ;;  %v7124_v4 = vld [vmem:[%s9651_s1 + $0x70] sm:$0xff]   ;;  %v7128_v8 = vld [vmem:[%s9651_s1 + $0x68] sm:$0xff]  }
   0x2   :  { %v7121_v1 = vld [vmem:[%s9651_s1 + $0xf8] sm:$0xff]   ;;  %6416 = vmatprep.subr.bf16.mxu0 %v7120_v0  ;;  %v7125_v5 = vld [vmem:[%s9651_s1 + $0xf0] sm:$0xff]   ;;  %v7129_v9 = vld [vmem:[%s9651_s1 + $0xe8] sm:$0xff]  }
   0x3   :  { %v7122_v2 = vld [vmem:[%s9651_s1 + $0x38] sm:$0xff]   ;;  %6438 = vmatprep.subr.bf16.mxu1 %v7121_v1  ;;  %v7126_v6 = vld [vmem:[%s9651_s1 + $0x30] sm:$0xff]   ;;  %v7130_v10 = vld [vmem:[%s9651_s1 + $0x28] sm:$0xff]  }
   0x4   :  { %v7123_v3 = vld [vmem:[%s9651_s1 + $0xb8] sm:$0xff]   ;;  %6417 = vmatpush3.bf16.msra.mxu0 %v7122_v2  ;;  %v7127_v7 = vld [vmem:[%s9651_s1 + $0xb0] sm:$0xff]   ;;  %v7131_v11 = vld [vmem:[%s9651_s1 + $0xa8] sm:$0xff]  }
   0x5   :  { %6439 = vmatpush3.bf16.msra.mxu1 %v7123_v3  ;;  %6418 = vmatprep.subr.bf16.mxu0 %v7124_v4  ;;  %v7132_v12 = vld [vmem:[%s9651_s1 + $0x60] sm:$0xff]   ;;  %v7136_v16 = vld [vmem:[%s9651_s1 + $0x58] sm:$0xff]   ;;  %v7140_v20 = vld [vmem:[%s9651_s1 + $0x50] sm:$0xff]  }
   0x6   :  { %6440 = vmatprep.subr.bf16.mxu1 %v7125_v5  ;;  %v7133_v13 = vld [vmem:[%s9651_s1 + $0xe0] sm:$0xff]   ;;  %v7137_v17 = vld [vmem:[%s9651_s1 + $0xd8] sm:$0xff]   ;;  %v7141_v21 = vld [vmem:[%s9651_s1 + $0xd0] sm:$0xff]  }
   0x7   :  { %v7134_v14 = vld [vmem:[%s9651_s1 + $0x20] sm:$0xff]   ;;  %v7138_v18 = vld [vmem:[%s9651_s1 + $0x18] sm:$0xff]   ;;  %v7142_v22 = vld [vmem:[%s9651_s1 + $0x10] sm:$0xff]  }
   0x8   :  { %6419 = vmatpush3.bf16.msra.mxu0 %v7126_v6  ;;  %v7135_v15 = vld [vmem:[%s9651_s1 + $0xa0] sm:$0xff]   ;;  %v7139_v19 = vld [vmem:[%s9651_s1 + $0x98] sm:$0xff]   ;;  %v7143_v23 = vld [vmem:[%s9651_s1 + $0x90] sm:$0xff]  }
   0x9   :  { %6441 = vmatpush3.bf16.msra.mxu1 %v7127_v7  ;;  %6420 = vmatprep.subr.bf16.mxu0 %v7128_v8  ;;  %v7144_v24 = vld [vmem:[%s9651_s1 + $0x48] sm:$0xff]   ;;  %v7148_v28 = vld [vmem:[%s9651_s1 + $0x40] sm:$0xff]   ;;  %v7152_v40 = vld [vmem:[%s9651_s1 + $0x178] sm:$0xff]  }
   0xa   :  { %6442 = vmatprep.subr.bf16.mxu1 %v7129_v9  ;;  %v7145_v25 = vld [vmem:[%s9651_s1 + $0xc8] sm:$0xff]   ;;  %v7149_v29 = vld [vmem:[%s9651_s1 + $0xc0] sm:$0xff]   ;;  %v7153_v41 = vld [vmem:[%s9651_s1 + $0x1f8] sm:$0xff]  }
   0xb   :  { %v7146_v26 = vld [vmem:[%s9651_s1 + $0x8] sm:$0xff]   ;;  %v7150_v30 = vld [vmem:[%s9651_s1] sm:$0xff]   ;;  %v7154_v42 = vld [vmem:[%s9651_s1 + $0x138] sm:$0xff]  }
   0xc   :  { %6421 = vmatpush3.bf16.msra.mxu0 %v7130_v10  ;;  %v7147_v27 = vld [vmem:[%s9651_s1 + $0x88] sm:$0xff]   ;;  %v7151_v31 = vld [vmem:[%s9651_s1 + $0x80] sm:$0xff]   ;;  %v7155_v43 = vld [vmem:[%s9651_s1 + $0x1b8] sm:$0xff]  }
   0xd   :  { %6443 = vmatpush3.bf16.msra.mxu1 %v7131_v11  ;;  %6422 = vmatprep.subr.bf16.mxu0 %v7132_v12  ;;  %v15_v32 = vld [vmem:[%s9652_s0] sm:$0xff]  ;;  %v16_v34 = vld [vmem:[%s9652_s0 + $0x8] sm:$0xff]  ;;  %v7156_v44 = vld [vmem:[%s9651_s1 + $0x170] sm:$0xff]  }
   0xe   :  { %6444 = vmatprep.subr.bf16.mxu1 %v7133_v13  ;;  %v47_v33 = vld [vmem:[%s9652_s0 + $0x100] sm:$0xff]  ;;  %v48_v37 = vld [vmem:[%s9652_s0 + $0x108] sm:$0xff]  ;;  %v7157_v45 = vld [vmem:[%s9651_s1 + $0x1f0] sm:$0xff]  }
   0xf   :  { %v5831_v35 = vcombine.low %v15_v32, %v47_v33  ;;  %v5832_v36 = vcombine.high %v15_v32, %v47_v33  ;;  %v5833_v38 = vcombine.low %v16_v34, %v48_v37  ;;  %v5834_v39 = vcombine.high %v16_v34, %v48_v37  ;;  %v7158_v46 = vld [vmem:[%s9651_s1 + $0x130] sm:$0xff]   ;;  %v7160_v48 = vld [vmem:[%s9651_s1 + $0x168] sm:$0xff]   ;;  %v7164_v52 = vld [vmem:[%s9651_s1 + $0x160] sm:$0xff]  }
  0x10   :  { %6423 = vmatpush3.bf16.msra.mxu0 %v7134_v14  ;;  %v7159_v47 = vld [vmem:[%s9651_s1 + $0x1b0] sm:$0xff]   ;;  %v7161_v49 = vld [vmem:[%s9651_s1 + $0x1e8] sm:$0xff]   ;;  %v7165_v53 = vld [vmem:[%s9651_s1 + $0x1e0] sm:$0xff]  }
  0x11   :  { %6445 = vmatpush3.bf16.msra.mxu1 %v7135_v15  ;;  %6424 = vmatprep.subr.bf16.mxu0 %v7136_v16  ;;  %v7162_v50 = vld [vmem:[%s9651_s1 + $0x128] sm:$0xff]   ;;  %v7166_v54 = vld [vmem:[%s9651_s1 + $0x120] sm:$0xff]   ;;  %v7168_v56 = vld [vmem:[%s9651_s1 + $0x158] sm:$0xff]  }
  0x12   :  { %6446 = vmatprep.subr.bf16.mxu1 %v7137_v17  ;;  %4534 = vmatprep.mubr.bf16.mxu0 %v5832_v36  ;;  %v7163_v51 = vld [vmem:[%s9651_s1 + $0x1a8] sm:$0xff]   ;;  %v7167_v55 = vld [vmem:[%s9651_s1 + $0x1a0] sm:$0xff]   ;;  %v7169_v57 = vld [vmem:[%s9651_s1 + $0x1d8] sm:$0xff]  }
  0x13   :  { %4575 = vmatprep.mubr.bf16.mxu1 %v5834_v39  ;;  %v7170_v58 = vld [vmem:[%s9651_s1 + $0x118] sm:$0xff]   ;;  %v7172_v60 = vld [vmem:[%s9651_s1 + $0x150] sm:$0xff]   ;;  %v7176_v0 = vld [vmem:[%s9651_s1 + $0x148] sm:$0xff]  }
  0x14   :  { %6425 = vmatpush3.bf16.msra.mxu0 %v7138_v18  ;;  %v7171_v59 = vld [vmem:[%s9651_s1 + $0x198] sm:$0xff]   ;;  %v7173_v61 = vld [vmem:[%s9651_s1 + $0x1d0] sm:$0xff]   ;;  %v7177_v1 = vld [vmem:[%s9651_s1 + $0x1c8] sm:$0xff]  }
  0x15   :  { %6447 = vmatpush3.bf16.msra.mxu1 %v7139_v19  ;;  %6426 = vmatprep.subr.bf16.mxu0 %v7140_v20  ;;  %v7174_v62 = vld [vmem:[%s9651_s1 + $0x110] sm:$0xff]   ;;  %v7178_v2 = vld [vmem:[%s9651_s1 + $0x108] sm:$0xff]   ;;  %v7180_v4 = vld [vmem:[%s9651_s1 + $0x140] sm:$0xff]  }
  0x16   :  { %6448 = vmatprep.subr.bf16.mxu1 %v7141_v21  ;;  %v7175_v63 = vld [vmem:[%s9651_s1 + $0x190] sm:$0xff]   ;;  %v7179_v3 = vld [vmem:[%s9651_s1 + $0x188] sm:$0xff]   ;;  %v7181_v5 = vld [vmem:[%s9651_s1 + $0x1c0] sm:$0xff]  }
  0x17   :  { %v7182_v6 = vld [vmem:[%s9651_s1 + $0x100] sm:$0xff]   ;;  %v17_v8 = vld [vmem:[%s9652_s0 + $0x10] sm:$0xff]  ;;  %v18_v12 = vld [vmem:[%s9652_s0 + $0x18] sm:$0xff] }
  0x18   :  { %6427 = vmatpush3.bf16.msra.mxu0 %v7142_v22  ;;  %v7183_v7 = vld [vmem:[%s9651_s1 + $0x180] sm:$0xff]   ;;  %v49_v9 = vld [vmem:[%s9652_s0 + $0x110] sm:$0xff]  ;;  %v50_v13 = vld [vmem:[%s9652_s0 + $0x118] sm:$0xff] }
  0x19   :  { %6449 = vmatpush3.bf16.msra.mxu1 %v7143_v23  ;;  %6428 = vmatprep.subr.bf16.mxu0 %v7144_v24  ;;  %v5835_v10 = vcombine.low %v17_v8, %v49_v9  ;;  %v5836_v11 = vcombine.high %v17_v8, %v49_v9  ;;  %v5837_v14 = vcombine.low %v18_v12, %v50_v13  ;;  %v7184_v16 = vld [vmem:[%s9651_s1 + $0x278] sm:$0xff]   ;;  %v7188_v20 = vld [vmem:[%s9651_s1 + $0x270] sm:$0xff]   ;;  %v7192_v24 = vld [vmem:[%s9651_s1 + $0x268] sm:$0xff]  }
  0x1a   :  { %6450 = vmatprep.subr.bf16.mxu1 %v7145_v25  ;;  %v5838_v15 = vcombine.high %v18_v12, %v50_v13  ;;  %v7185_v17 = vld [vmem:[%s9651_s1 + $0x2f8] sm:$0xff]   ;;  %v7189_v21 = vld [vmem:[%s9651_s1 + $0x2f0] sm:$0xff]   ;;  %v7193_v25 = vld [vmem:[%s9651_s1 + $0x2e8] sm:$0xff]  }
  0x1b   :  { %v7186_v18 = vld [vmem:[%s9651_s1 + $0x238] sm:$0xff]   ;;  %v7190_v22 = vld [vmem:[%s9651_s1 + $0x230] sm:$0xff]  }
  0x1c   :  { %6429 = vmatpush3.bf16.msra.mxu0 %v7146_v26  ;;  %v7187_v19 = vld [vmem:[%s9651_s1 + $0x2b8] sm:$0xff]   ;;  %v7191_v23 = vld [vmem:[%s9651_s1 + $0x2b0] sm:$0xff]   ;;  %v7194_v26 = vld [vmem:[%s9651_s1 + $0x228] sm:$0xff]  }
  0x1d   :  { %6451 = vmatpush3.bf16.msra.mxu1 %v7147_v27  ;;  %6430 = vmatprep.subr.bf16.mxu0 %v7148_v28  ;;  %v7195_v27 = vld [vmem:[%s9651_s1 + $0x2a8] sm:$0xff]   ;;  %v7196_v28 = vld [vmem:[%s9651_s1 + $0x260] sm:$0xff]   ;;  %v7200_v32 = vld [vmem:[%s9651_s1 + $0x258] sm:$0xff]  }
  0x1e   :  { %6452 = vmatprep.subr.bf16.mxu1 %v7149_v29  ;;  %v7197_v29 = vld [vmem:[%s9651_s1 + $0x2e0] sm:$0xff]   ;;  %v7201_v33 = vld [vmem:[%s9651_s1 + $0x2d8] sm:$0xff]   ;;  %v7204_v36 = vld [vmem:[%s9651_s1 + $0x250] sm:$0xff]  }
  0x1f   :  { %v7202_v34 = vld [vmem:[%s9651_s1 + $0x218] sm:$0xff]   ;;  %v7205_v37 = vld [vmem:[%s9651_s1 + $0x2d0] sm:$0xff]  }
  0x20   :  { %6431 = vmatpush3.bf16.msra.mxu0 %v7150_v30  ;;  %v7198_v30 = vld [vmem:[%s9651_s1 + $0x220] sm:$0xff]   ;;  %v7207_v39 = vld [vmem:[%s9651_s1 + $0x290] sm:$0xff]   ;;  %v7232_v8 = vld [vmem:[%s9651_s1 + $0x358] sm:$0xff]  }
  0x21   :  { %6453 = vmatpush3.bf16.msra.mxu1 %v7151_v31  ;;  %6460 = vmatprep.subr.bf16.mxu0 %v7152_v40  ;;  %v7199_v31 = vld [vmem:[%s9651_s1 + $0x2a0] sm:$0xff]   ;;  %v7208_v40 = vld [vmem:[%s9651_s1 + $0x248] sm:$0xff]   ;;  %v7233_v9 = vld [vmem:[%s9651_s1 + $0x3d8] sm:$0xff]  }
  0x22   :  { %6482 = vmatprep.subr.bf16.mxu1 %v7153_v41  ;;  %v7209_v41 = vld [vmem:[%s9651_s1 + $0x2c8] sm:$0xff]   ;;  %v7236_v12 = vld [vmem:[%s9651_s1 + $0x350] sm:$0xff]  }
  0x23   :  { %4535 = vmatmul.mubr.bf16.vlgmr.msra.gmra.mxu0 %v5831_v35  ;;  %v7203_v35 = vld [vmem:[%s9651_s1 + $0x298] sm:$0xff]   ;;  %v7237_v13 = vld [vmem:[%s9651_s1 + $0x3d0] sm:$0xff]  }
  0x24   :  { %4576 = vmatmul.mubr.bf16.vlgmr.msra.gmra.mxu1 %v5833_v38  ;;  %6461 = vmatpush3.bf16.msra.mxu0 %v7154_v42  ;;  %v7206_v38 = vld [vmem:[%s9651_s1 + $0x210] sm:$0xff]   ;;  %v7210_v42 = vld [vmem:[%s9651_s1 + $0x208] sm:$0xff]  }
  0x25   :  { %6483 = vmatpush3.bf16.msra.mxu1 %v7155_v43  ;;  %6462 = vmatprep.subr.bf16.mxu0 %v7156_v44  ;;  %v7211_v43 = vld [vmem:[%s9651_s1 + $0x288] sm:$0xff]   ;;  %v7212_v44 = vld [vmem:[%s9651_s1 + $0x240] sm:$0xff]  }
  0x26   :  { %6484 = vmatprep.subr.bf16.mxu1 %v7157_v45  ;;  %4616 = vmatprep.mubr.bf16.mxu0 %v5836_v11  ;;  %v7213_v45 = vld [vmem:[%s9651_s1 + $0x2c0] sm:$0xff]   ;;  %v7235_v11 = vld [vmem:[%s9651_s1 + $0x398] sm:$0xff]  }
  0x27   :  { %4657 = vmatprep.mubr.bf16.mxu1 %v5838_v15  ;;  %v7239_v15 = vld [vmem:[%s9651_s1 + $0x390] sm:$0xff]  }
  0x28   :  { %6463 = vmatpush3.bf16.msra.mxu0 %v7158_v46  ;;  %v7214_v46 = vld [vmem:[%s9651_s1 + $0x200] sm:$0xff]  }
  0x29   :  { %6485 = vmatpush3.bf16.msra.mxu1 %v7159_v47  ;;  %6464 = vmatprep.subr.bf16.mxu0 %v7160_v48  ;;  %v7215_v47 = vld [vmem:[%s9651_s1 + $0x280] sm:$0xff]  }
  0x2a   :  { %6486 = vmatprep.subr.bf16.mxu1 %v7161_v49  ;;  %v19_v48 = vld [vmem:[%s9652_s0 + $0x20] sm:$0xff] }
  0x2b   :  { %v51_v49 = vld [vmem:[%s9652_s0 + $0x120] sm:$0xff] }
  0x2c   :  { %6465 = vmatpush3.bf16.msra.mxu0 %v7162_v50  ;;  %v20_v50 = vld [vmem:[%s9652_s0 + $0x28] sm:$0xff] }
  0x2d   :  { %6487 = vmatpush3.bf16.msra.mxu1 %v7163_v51  ;;  %6466 = vmatprep.subr.bf16.mxu0 %v7164_v52  ;;  %v52_v51 = vld [vmem:[%s9652_s0 + $0x128] sm:$0xff]  ;;  %v5839_v52 = vcombine.low %v19_v48, %v51_v49 }
  0x2e   :  { %6488 = vmatprep.subr.bf16.mxu1 %v7165_v53  ;;  %v5840_v53 = vcombine.high %v19_v48, %v51_v49  ;;  %v7264_v48 = vld [vmem:[%s9651_s1 + $0x458] sm:$0xff]  }
  0x2f   :  { %v7265_v49 = vld [vmem:[%s9651_s1 + $0x4d8] sm:$0xff]  }
  0x30   :  { %6467 = vmatpush3.bf16.msra.mxu0 %v7166_v54  ;;  %v5841_v54 = vcombine.low %v20_v50, %v52_v51 }
  0x31   :  { %6489 = vmatpush3.bf16.msra.mxu1 %v7167_v55  ;;  %6468 = vmatprep.subr.bf16.mxu0 %v7168_v56  ;;  %v5842_v55 = vcombine.high %v20_v50, %v52_v51  ;;  %v7216_v56 = vld [vmem:[%s9651_s1 + $0x378] sm:$0xff]  }
  0x32   :  { %6490 = vmatprep.subr.bf16.mxu1 %v7169_v57  ;;  %v7217_v57 = vld [vmem:[%s9651_s1 + $0x3f8] sm:$0xff]  }
  0x33   :  { %v7266_v50 = vld [vmem:[%s9651_s1 + $0x418] sm:$0xff]  }
  0x34   :  { %6469 = vmatpush3.bf16.msra.mxu0 %v7170_v58  ;;  %v7218_v58 = vld [vmem:[%s9651_s1 + $0x338] sm:$0xff]  }
  0x35   :  { %6491 = vmatpush3.bf16.msra.mxu1 %v7171_v59  ;;  %6470 = vmatprep.subr.bf16.mxu0 %v7172_v60  ;;  %v7219_v59 = vld [vmem:[%s9651_s1 + $0x3b8] sm:$0xff]   ;;  %v7220_v60 = vld [vmem:[%s9651_s1 + $0x370] sm:$0xff]  }
  0x36   :  { %6492 = vmatprep.subr.bf16.mxu1 %v7173_v61  ;;  %v7221_v61 = vld [vmem:[%s9651_s1 + $0x3f0] sm:$0xff]   ;;  %v7267_v51 = vld [vmem:[%s9651_s1 + $0x498] sm:$0xff]  }
  0x38   :  { %6471 = vmatpush3.bf16.msra.mxu0 %v7174_v62  ;;  %v7222_v62 = vld [vmem:[%s9651_s1 + $0x330] sm:$0xff]  }
  0x39   :  { %6493 = vmatpush3.bf16.msra.mxu1 %v7175_v63  ;;  %6472 = vmatprep.subr.bf16.mxu0 %v7176_v0  ;;  %v7223_v63 = vld [vmem:[%s9651_s1 + $0x3b0] sm:$0xff]   ;;  %v7224_v0 = vld [vmem:[%s9651_s1 + $0x368] sm:$0xff]  }
  0x3a   :  { %6494 = vmatprep.subr.bf16.mxu1 %v7177_v1  ;;  %v7225_v1 = vld [vmem:[%s9651_s1 + $0x3e8] sm:$0xff]  }
  0x3c   :  { %6473 = vmatpush3.bf16.msra.mxu0 %v7178_v2  ;;  %v7226_v2 = vld [vmem:[%s9651_s1 + $0x328] sm:$0xff]  }
  0x3d   :  { %6495 = vmatpush3.bf16.msra.mxu1 %v7179_v3  ;;  %6474 = vmatprep.subr.bf16.mxu0 %v7180_v4  ;;  %v7227_v3 = vld [vmem:[%s9651_s1 + $0x3a8] sm:$0xff]   ;;  %v7228_v4 = vld [vmem:[%s9651_s1 + $0x360] sm:$0xff]  }
  0x3e   :  { %6496 = vmatprep.subr.bf16.mxu1 %v7181_v5  ;;  %v7229_v5 = vld [vmem:[%s9651_s1 + $0x3e0] sm:$0xff]  }
  0x40   :  { %6475 = vmatpush3.bf16.msra.mxu0 %v7182_v6  ;;  %v7230_v6 = vld [vmem:[%s9651_s1 + $0x320] sm:$0xff]  }
  0x41   :  { %6497 = vmatpush3.bf16.msra.mxu1 %v7183_v7  ;;  %6504 = vmatprep.subr.bf16.mxu0 %v7184_v16  ;;  %v7231_v7 = vld [vmem:[%s9651_s1 + $0x3a0] sm:$0xff]   ;;  %v7240_v16 = vld [vmem:[%s9651_s1 + $0x348] sm:$0xff]  }
  0x42   :  { %6526 = vmatprep.subr.bf16.mxu1 %v7185_v17  ;;  %v7241_v17 = vld [vmem:[%s9651_s1 + $0x3c8] sm:$0xff]  }
  0x43   :  { %4617 = vmatmul.mubr.bf16.vlgmr.msra.gmra.mxu0 %v5835_v10  ;;  %v7234_v10 = vld [vmem:[%s9651_s1 + $0x318] sm:$0xff]  }
  0x44   :  { %4658 = vmatmul.mubr.bf16.vlgmr.msra.gmra.mxu1 %v5837_v14  ;;  %6505 = vmatpush3.bf16.msra.mxu0 %v7186_v18  ;;  %v7238_v14 = vld [vmem:[%s9651_s1 + $0x310] sm:$0xff]   ;;  %v7242_v18 = vld [vmem:[%s9651_s1 + $0x308] sm:$0xff]  }
  0x45   :  { %6527 = vmatpush3.bf16.msra.mxu1 %v7187_v19  ;;  %6506 = vmatprep.subr.bf16.mxu0 %v7188_v20  ;;  %v7243_v19 = vld [vmem:[%s9651_s1 + $0x388] sm:$0xff]   ;;  %v7244_v20 = vld [vmem:[%s9651_s1 + $0x340] sm:$0xff]  }
  0x46   :  { %6528 = vmatprep.subr.bf16.mxu1 %v7189_v21  ;;  %4698 = vmatprep.mubr.bf16.mxu0 %v5840_v53  ;;  %v7245_v21 = vld [vmem:[%s9651_s1 + $0x3c0] sm:$0xff]   ;;  %v7269_v53 = vld [vmem:[%s9651_s1 + $0x4d0] sm:$0xff]  }
  0x47   :  { %4739 = vmatprep.mubr.bf16.mxu1 %v5842_v55  ;;  %v7271_v55 = vld [vmem:[%s9651_s1 + $0x490] sm:$0xff]  }
  0x48   :  { %6507 = vmatpush3.bf16.msra.mxu0 %v7190_v22  ;;  %v7246_v22 = vld [vmem:[%s9651_s1 + $0x300] sm:$0xff]  }
  0x49   :  { %6529 = vmatpush3.bf16.msra.mxu1 %v7191_v23  ;;  %6508 = vmatprep.subr.bf16.mxu0 %v7192_v24  ;;  %v7247_v23 = vld [vmem:[%s9651_s1 + $0x380] sm:$0xff]   ;;  %v21_v24 = vld [vmem:[%s9652_s0 + $0x30] sm:$0xff] }
  0x4a   :  { %6530 = vmatprep.subr.bf16.mxu1 %v7193_v25  ;;  %v53_v25 = vld [vmem:[%s9652_s0 + $0x130] sm:$0xff] }
  0x4c   :  { %6509 = vmatpush3.bf16.msra.mxu0 %v7194_v26  ;;  %v22_v26 = vld [vmem:[%s9652_s0 + $0x38] sm:$0xff] }
  0x4d   :  { %6531 = vmatpush3.bf16.msra.mxu1 %v7195_v27  ;;  %6510 = vmatprep.subr.bf16.mxu0 %v7196_v28  ;;  %v5843_v27 = vcombine.low %v21_v24, %v53_v25  ;;  %v5844_v28 = vcombine.high %v21_v24, %v53_v25  ;;  %v7296_v24 = vld [vmem:[%s9651_s1 + $0x558] sm:$0xff]  }
  0x4e   :  { %6532 = vmatprep.subr.bf16.mxu1 %v7197_v29  ;;  %v54_v29 = vld [vmem:[%s9652_s0 + $0x138] sm:$0xff] }
  0x4f   :  { %v7297_v25 = vld [vmem:[%s9651_s1 + $0x5d8] sm:$0xff]  }
  0x50   :  { %6511 = vmatpush3.bf16.msra.mxu0 %v7198_v30  ;;  %v5845_v30 = vcombine.low %v22_v26, %v54_v29 }
  0x51   :  { %6533 = vmatpush3.bf16.msra.mxu1 %v7199_v31  ;;  %6512 = vmatprep.subr.bf16.mxu0 %v7200_v32  ;;  %v5846_v31 = vcombine.high %v22_v26, %v54_v29  ;;  %v7248_v32 = vld [vmem:[%s9651_s1 + $0x478] sm:$0xff]   ;;  %v7301_v29 = vld [vmem:[%s9651_s1 + $0x5d0] sm:$0xff]  }
  0x52   :  { %6534 = vmatprep.subr.bf16.mxu1 %v7201_v33  ;;  %v7249_v33 = vld [vmem:[%s9651_s1 + $0x4f8] sm:$0xff]  }
  0x53   :  { %v7298_v26 = vld [vmem:[%s9651_s1 + $0x518] sm:$0xff]  }
  0x54   :  { %6513 = vmatpush3.bf16.msra.mxu0 %v7202_v34  ;;  %v7250_v34 = vld [vmem:[%s9651_s1 + $0x438] sm:$0xff]  }
  0x55   :  { %6535 = vmatpush3.bf16.msra.mxu1 %v7203_v35  ;;  %6514 = vmatprep.subr.bf16.mxu0 %v7204_v36  ;;  %v7251_v35 = vld [vmem:[%s9651_s1 + $0x4b8] sm:$0xff]   ;;  %v7252_v36 = vld [vmem:[%s9651_s1 + $0x470] sm:$0xff]  }
  0x56   :  { %6536 = vmatprep.subr.bf16.mxu1 %v7205_v37  ;;  %v7253_v37 = vld [vmem:[%s9651_s1 + $0x4f0] sm:$0xff]  }
  0x58   :  { %6515 = vmatpush3.bf16.msra.mxu0 %v7206_v38  ;;  %v7254_v38 = vld [vmem:[%s9651_s1 + $0x430] sm:$0xff]  }
  0x59   :  { %6537 = vmatpush3.bf16.msra.mxu1 %v7207_v39  ;;  %6516 = vmatprep.subr.bf16.mxu0 %v7208_v40  ;;  %v7255_v39 = vld [vmem:[%s9651_s1 + $0x4b0] sm:$0xff]   ;;  %v7256_v40 = vld [vmem:[%s9651_s1 + $0x468] sm:$0xff]  }
  0x5a   :  { %6538 = vmatprep.subr.bf16.mxu1 %v7209_v41  ;;  %v7257_v41 = vld [vmem:[%s9651_s1 + $0x4e8] sm:$0xff]  }
  0x5c   :  { %6517 = vmatpush3.bf16.msra.mxu0 %v7210_v42  ;;  %v7258_v42 = vld [vmem:[%s9651_s1 + $0x428] sm:$0xff]  }
  0x5d   :  { %6539 = vmatpush3.bf16.msra.mxu1 %v7211_v43  ;;  %6518 = vmatprep.subr.bf16.mxu0 %v7212_v44  ;;  %v7259_v43 = vld [vmem:[%s9651_s1 + $0x4a8] sm:$0xff]   ;;  %v7260_v44 = vld [vmem:[%s9651_s1 + $0x460] sm:$0xff]  }
  0x5e   :  { %6540 = vmatprep.subr.bf16.mxu1 %v7213_v45  ;;  %v7261_v45 = vld [vmem:[%s9651_s1 + $0x4e0] sm:$0xff]  }
  0x60   :  { %6519 = vmatpush3.bf16.msra.mxu0 %v7214_v46  ;;  %v7262_v46 = vld [vmem:[%s9651_s1 + $0x420] sm:$0xff]  }
  0x61   :  { %6541 = vmatpush3.bf16.msra.mxu1 %v7215_v47  ;;  %6548 = vmatprep.subr.bf16.mxu0 %v7216_v56  ;;  %v7263_v47 = vld [vmem:[%s9651_s1 + $0x4a0] sm:$0xff]   ;;  %v7272_v56 = vld [vmem:[%s9651_s1 + $0x448] sm:$0xff]  }
  0x62   :  { %6570 = vmatprep.subr.bf16.mxu1 %v7217_v57  ;;  %v7273_v57 = vld [vmem:[%s9651_s1 + $0x4c8] sm:$0xff]  }
  0x63   :  { %4699 = vmatmul.mubr.bf16.vlgmr.msra.gmra.mxu0 %v5839_v52  ;;  %v7268_v52 = vld [vmem:[%s9651_s1 + $0x450] sm:$0xff]  }
  0x64   :  { %4740 = vmatmul.mubr.bf16.vlgmr.msra.gmra.mxu1 %v5841_v54  ;;  %6549 = vmatpush3.bf16.msra.mxu0 %v7218_v58  ;;  %v7270_v54 = vld [vmem:[%s9651_s1 + $0x410] sm:$0xff]   ;;  %v7274_v58 = vld [vmem:[%s9651_s1 + $0x408] sm:$0xff]  }
  0x65   :  { %6571 = vmatpush3.bf16.msra.mxu1 %v7219_v59  ;;  %6550 = vmatprep.subr.bf16.mxu0 %v7220_v60  ;;  %v7275_v59 = vld [vmem:[%s9651_s1 + $0x488] sm:$0xff]   ;;  %v7276_v60 = vld [vmem:[%s9651_s1 + $0x440] sm:$0xff]  }
  0x66   :  { %6572 = vmatprep.subr.bf16.mxu1 %v7221_v61  ;;  %4780 = vmatprep.mubr.bf16.mxu0 %v5844_v28  ;;  %v7277_v61 = vld [vmem:[%s9651_s1 + $0x4c0] sm:$0xff]   ;;  %v7300_v28 = vld [vmem:[%s9651_s1 + $0x550] sm:$0xff]  }
  0x67   :  { %4821 = vmatprep.mubr.bf16.mxu1 %v5846_v31  ;;  %v7303_v31 = vld [vmem:[%s9651_s1 + $0x590] sm:$0xff]  }
  0x68   :  { %6551 = vmatpush3.bf16.msra.mxu0 %v7222_v62  ;;  %v7278_v62 = vld [vmem:[%s9651_s1 + $0x400] sm:$0xff]  }
  0x69   :  { %6573 = vmatpush3.bf16.msra.mxu1 %v7223_v63  ;;  %6552 = vmatprep.subr.bf16.mxu0 %v7224_v0  ;;  %v7279_v63 = vld [vmem:[%s9651_s1 + $0x480] sm:$0xff]  }
  0x6a   :  { %6574 = vmatprep.subr.bf16.mxu1 %v7225_v1  ;;  %v23_v0 = vld [vmem:[%s9652_s0 + $0x40] sm:$0xff] }
  0x6b   :  { %v55_v1 = vld [vmem:[%s9652_s0 + $0x140] sm:$0xff] }
  0x6c   :  { %6553 = vmatpush3.bf16.msra.mxu0 %v7226_v2  ;;  %v5847_v2 = vcombine.low %v23_v0, %v55_v1 }
  0x6d   :  { %6575 = vmatpush3.bf16.msra.mxu1 %v7227_v3  ;;  %6554 = vmatprep.subr.bf16.mxu0 %v7228_v4  ;;  %v5848_v3 = vcombine.high %v23_v0, %v55_v1  ;;  %v24_v4 = vld [vmem:[%s9652_s0 + $0x48] sm:$0xff]  ;;  %v7328_v0 = vld [vmem:[%s9651_s1 + $0x658] sm:$0xff]  }
  0x6e   :  { %6576 = vmatprep.subr.bf16.mxu1 %v7229_v5  ;;  %v56_v5 = vld [vmem:[%s9652_s0 + $0x148] sm:$0xff]  ;;  %v7329_v1 = vld [vmem:[%s9651_s1 + $0x6d8] sm:$0xff]  }
  0x70   :  { %6555 = vmatpush3.bf16.msra.mxu0 %v7230_v6  ;;  %v5849_v6 = vcombine.low %v24_v4, %v56_v5 }
  0x71   :  { %6577 = vmatpush3.bf16.msra.mxu1 %v7231_v7  ;;  %6556 = vmatprep.subr.bf16.mxu0 %v7232_v8  ;;  %v5850_v7 = vcombine.high %v24_v4, %v56_v5  ;;  %v7280_v8 = vld [vmem:[%s9651_s1 + $0x578] sm:$0xff]   ;;  %v7332_v4 = vld [vmem:[%s9651_s1 + $0x650] sm:$0xff]  }
  0x72   :  { %6578 = vmatprep.subr.bf16.mxu1 %v7233_v9  ;;  %v7281_v9 = vld [vmem:[%s9651_s1 + $0x5f8] sm:$0xff]   ;;  %v7333_v5 = vld [vmem:[%s9651_s1 + $0x6d0] sm:$0xff]  }
  0x74   :  { %6557 = vmatpush3.bf16.msra.mxu0 %v7234_v10  ;;  %v7282_v10 = vld [vmem:[%s9651_s1 + $0x538] sm:$0xff]  }
  0x75   :  { %6579 = vmatpush3.bf16.msra.mxu1 %v7235_v11  ;;  %6558 = vmatprep.subr.bf16.mxu0 %v7236_v12  ;;  %v7283_v11 = vld [vmem:[%s9651_s1 + $0x5b8] sm:$0xff]   ;;  %v7284_v12 = vld [vmem:[%s9651_s1 + $0x570] sm:$0xff]  }
  0x76   :  { %6580 = vmatprep.subr.bf16.mxu1 %v7237_v13  ;;  %v7285_v13 = vld [vmem:[%s9651_s1 + $0x5f0] sm:$0xff]  }
  0x78   :  { %6559 = vmatpush3.bf16.msra.mxu0 %v7238_v14  ;;  %v7286_v14 = vld [vmem:[%s9651_s1 + $0x530] sm:$0xff]  }
  0x79   :  { %6581 = vmatpush3.bf16.msra.mxu1 %v7239_v15  ;;  %6560 = vmatprep.subr.bf16.mxu0 %v7240_v16  ;;  %v7287_v15 = vld [vmem:[%s9651_s1 + $0x5b0] sm:$0xff]   ;;  %v7288_v16 = vld [vmem:[%s9651_s1 + $0x568] sm:$0xff]  }
  0x7a   :  { %6582 = vmatprep.subr.bf16.mxu1 %v7241_v17  ;;  %v7289_v17 = vld [vmem:[%s9651_s1 + $0x5e8] sm:$0xff]  }
  0x7c   :  { %6561 = vmatpush3.bf16.msra.mxu0 %v7242_v18  ;;  %v7290_v18 = vld [vmem:[%s9651_s1 + $0x528] sm:$0xff]  }
  0x7d   :  { %6583 = vmatpush3.bf16.msra.mxu1 %v7243_v19  ;;  %6562 = vmatprep.subr.bf16.mxu0 %v7244_v20  ;;  %v7291_v19 = vld [vmem:[%s9651_s1 + $0x5a8] sm:$0xff]   ;;  %v7292_v20 = vld [vmem:[%s9651_s1 + $0x560] sm:$0xff]  }
  0x7e   :  { %6584 = vmatprep.subr.bf16.mxu1 %v7245_v21  ;;  %v7293_v21 = vld [vmem:[%s9651_s1 + $0x5e0] sm:$0xff]  }
  0x80   :  { %6563 = vmatpush3.bf16.msra.mxu0 %v7246_v22  ;;  %v7294_v22 = vld [vmem:[%s9651_s1 + $0x520] sm:$0xff]  }
  0x81   :  { %6585 = vmatpush3.bf16.msra.mxu1 %v7247_v23  ;;  %6592 = vmatprep.subr.bf16.mxu0 %v7248_v32  ;;  %v7295_v23 = vld [vmem:[%s9651_s1 + $0x5a0] sm:$0xff]   ;;  %v7304_v32 = vld [vmem:[%s9651_s1 + $0x548] sm:$0xff]  }
  0x82   :  { %6614 = vmatprep.subr.bf16.mxu1 %v7249_v33  ;;  %v7305_v33 = vld [vmem:[%s9651_s1 + $0x5c8] sm:$0xff]  }
  0x83   :  { %4781 = vmatmul.mubr.bf16.vlgmr.msra.gmra.mxu0 %v5843_v27  ;;  %v7299_v27 = vld [vmem:[%s9651_s1 + $0x598] sm:$0xff]  }
  0x84   :  { %4822 = vmatmul.mubr.bf16.vlgmr.msra.gmra.mxu1 %v5845_v30  ;;  %6593 = vmatpush3.bf16.msra.mxu0 %v7250_v34  ;;  %v7302_v30 = vld [vmem:[%s9651_s1 + $0x510] sm:$0xff]   ;;  %v7306_v34 = vld [vmem:[%s9651_s1 + $0x508] sm:$0xff]  }
  0x85   :  { %6615 = vmatpush3.bf16.msra.mxu1 %v7251_v35  ;;  %6594 = vmatprep.subr.bf16.mxu0 %v7252_v36  ;;  %v7307_v35 = vld [vmem:[%s9651_s1 + $0x588] sm:$0xff]   ;;  %v7308_v36 = vld [vmem:[%s9651_s1 + $0x540] sm:$0xff]  }
  0x86   :  { %6616 = vmatprep.subr.bf16.mxu1 %v7253_v37  ;;  %4862 = vmatprep.mubr.bf16.mxu0 %v5848_v3  ;;  %v7309_v37 = vld [vmem:[%s9651_s1 + $0x5c0] sm:$0xff]   ;;  %v7331_v3 = vld [vmem:[%s9651_s1 + $0x698] sm:$0xff]  }
  0x87   :  { %4903 = vmatprep.mubr.bf16.mxu1 %v5850_v7  ;;  %v7335_v7 = vld [vmem:[%s9651_s1 + $0x690] sm:$0xff]  }
  0x88   :  { %6595 = vmatpush3.bf16.msra.mxu0 %v7254_v38  ;;  %v7310_v38 = vld [vmem:[%s9651_s1 + $0x500] sm:$0xff]  }
  0x89   :  { %6617 = vmatpush3.bf16.msra.mxu1 %v7255_v39  ;;  %6596 = vmatprep.subr.bf16.mxu0 %v7256_v40  ;;  %v7311_v39 = vld [vmem:[%s9651_s1 + $0x580] sm:$0xff]   ;;  %v25_v40 = vld [vmem:[%s9652_s0 + $0x50] sm:$0xff] }
  0x8a   :  { %6618 = vmatprep.subr.bf16.mxu1 %v7257_v41  ;;  %v57_v41 = vld [vmem:[%s9652_s0 + $0x150] sm:$0xff] }
  0x8c   :  { %6597 = vmatpush3.bf16.msra.mxu0 %v7258_v42  ;;  %v26_v42 = vld [vmem:[%s9652_s0 + $0x58] sm:$0xff] }
  0x8d   :  { %6619 = vmatpush3.bf16.msra.mxu1 %v7259_v43  ;;  %6598 = vmatprep.subr.bf16.mxu0 %v7260_v44  ;;  %v58_v43 = vld [vmem:[%s9652_s0 + $0x158] sm:$0xff]  ;;  %v5851_v44 = vcombine.low %v25_v40, %v57_v41 }
  0x8e   :  { %6620 = vmatprep.subr.bf16.mxu1 %v7261_v45  ;;  %v5852_v45 = vcombine.high %v25_v40, %v57_v41  ;;  %v7351_v40 = vld [vmem:[%s9651_s1 + $0x7b0] sm:$0xff]   ;;  %v7352_v41 = vld [vmem:[%s9651_s1 + $0x768] sm:$0xff]  }
  0x90   :  { %6599 = vmatpush3.bf16.msra.mxu0 %v7262_v46  ;;  %v5853_v46 = vcombine.low %v26_v42, %v58_v43 }
  0x91   :  { %6621 = vmatpush3.bf16.msra.mxu1 %v7263_v47  ;;  %6600 = vmatprep.subr.bf16.mxu0 %v7264_v48  ;;  %v5854_v47 = vcombine.high %v26_v42, %v58_v43  ;;  %v7312_v48 = vld [vmem:[%s9651_s1 + $0x678] sm:$0xff]   ;;  %v7353_v42 = vld [vmem:[%s9651_s1 + $0x7e8] sm:$0xff]  }
  0x92   :  { %6622 = vmatprep.subr.bf16.mxu1 %v7265_v49  ;;  %v7313_v49 = vld [vmem:[%s9651_s1 + $0x6f8] sm:$0xff]   ;;  %v7354_v43 = vld [vmem:[%s9651_s1 + $0x728] sm:$0xff]  }
  0x94   :  { %6601 = vmatpush3.bf16.msra.mxu0 %v7266_v50  ;;  %v7314_v50 = vld [vmem:[%s9651_s1 + $0x638] sm:$0xff]  }
  0x95   :  { %6623 = vmatpush3.bf16.msra.mxu1 %v7267_v51  ;;  %6602 = vmatprep.subr.bf16.mxu0 %v7268_v52  ;;  %v7315_v51 = vld [vmem:[%s9651_s1 + $0x6b8] sm:$0xff]   ;;  %v7316_v52 = vld [vmem:[%s9651_s1 + $0x670] sm:$0xff]  }
  0x96   :  { %6624 = vmatprep.subr.bf16.mxu1 %v7269_v53  ;;  %v7317_v53 = vld [vmem:[%s9651_s1 + $0x6f0] sm:$0xff]  }
  0x98   :  { %6603 = vmatpush3.bf16.msra.mxu0 %v7270_v54  ;;  %v7318_v54 = vld [vmem:[%s9651_s1 + $0x630] sm:$0xff]  }
  0x99   :  { %6625 = vmatpush3.bf16.msra.mxu1 %v7271_v55  ;;  %6604 = vmatprep.subr.bf16.mxu0 %v7272_v56  ;;  %v7319_v55 = vld [vmem:[%s9651_s1 + $0x6b0] sm:$0xff]   ;;  %v7320_v56 = vld [vmem:[%s9651_s1 + $0x668] sm:$0xff]  }
  0x9a   :  { %6626 = vmatprep.subr.bf16.mxu1 %v7273_v57  ;;  %v7321_v57 = vld [vmem:[%s9651_s1 + $0x6e8] sm:$0xff]  }
  0x9c   :  { %6605 = vmatpush3.bf16.msra.mxu0 %v7274_v58  ;;  %v7322_v58 = vld [vmem:[%s9651_s1 + $0x628] sm:$0xff]  }
  0x9d   :  { %6627 = vmatpush3.bf16.msra.mxu1 %v7275_v59  ;;  %6606 = vmatprep.subr.bf16.mxu0 %v7276_v60  ;;  %v7323_v59 = vld [vmem:[%s9651_s1 + $0x6a8] sm:$0xff]   ;;  %v7324_v60 = vld [vmem:[%s9651_s1 + $0x660] sm:$0xff]  }
  0x9e   :  { %6628 = vmatprep.subr.bf16.mxu1 %v7277_v61  ;;  %v7325_v61 = vld [vmem:[%s9651_s1 + $0x6e0] sm:$0xff]  }
  0xa0   :  { %6607 = vmatpush3.bf16.msra.mxu0 %v7278_v62  ;;  %v7326_v62 = vld [vmem:[%s9651_s1 + $0x620] sm:$0xff]  }
  0xa1   :  { %6629 = vmatpush3.bf16.msra.mxu1 %v7279_v63  ;;  %6636 = vmatprep.subr.bf16.mxu0 %v7280_v8  ;;  %v7327_v63 = vld [vmem:[%s9651_s1 + $0x6a0] sm:$0xff]   ;;  %v7336_v8 = vld [vmem:[%s9651_s1 + $0x648] sm:$0xff]  }
  0xa2   :  { %6658 = vmatprep.subr.bf16.mxu1 %v7281_v9  ;;  %v7337_v9 = vld [vmem:[%s9651_s1 + $0x6c8] sm:$0xff]  }
  0xa3   :  { %4863 = vmatmul.mubr.bf16.vlgmr.msra.gmra.mxu0 %v5847_v2  ;;  %v7330_v2 = vld [vmem:[%s9651_s1 + $0x618] sm:$0xff]  }
  0xa4   :  { %4904 = vmatmul.mubr.bf16.vlgmr.msra.gmra.mxu1 %v5849_v6  ;;  %6637 = vmatpush3.bf16.msra.mxu0 %v7282_v10  ;;  %v7334_v6 = vld [vmem:[%s9651_s1 + $0x610] sm:$0xff]   ;;  %v7338_v10 = vld [vmem:[%s9651_s1 + $0x608] sm:$0xff]  }
  0xa5   :  { %6659 = vmatpush3.bf16.msra.mxu1 %v7283_v11  ;;  %6638 = vmatprep.subr.bf16.mxu0 %v7284_v12  ;;  %v7339_v11 = vld [vmem:[%s9651_s1 + $0x688] sm:$0xff]   ;;  %v7340_v12 = vld [vmem:[%s9651_s1 + $0x640] sm:$0xff]  }
  0xa6   :  { %6660 = vmatprep.subr.bf16.mxu1 %v7285_v13  ;;  %4944 = vmatprep.mubr.bf16.mxu0 %v5852_v45  ;;  %v7356_v45 = vld [vmem:[%s9651_s1 + $0x760] sm:$0xff]  }
  0xa7   :  { %4985 = vmatprep.mubr.bf16.mxu1 %v5854_v47  ;;  %v7358_v47 = vld [vmem:[%s9651_s1 + $0x720] sm:$0xff]  }
  0xa8   :  { %6639 = vmatpush3.bf16.msra.mxu0 %v7286_v14  ;;  %v7341_v14 = vld [vmem:[%s9651_s1 + $0x6c0] sm:$0xff]  }
  0xa9   :  { %6661 = vmatpush3.bf16.msra.mxu1 %v7287_v15  ;;  %6640 = vmatprep.subr.bf16.mxu0 %v7288_v16  ;;  %v7342_v16 = vld [vmem:[%s9651_s1 + $0x600] sm:$0xff]  }
  0xaa   :  { %6662 = vmatprep.subr.bf16.mxu1 %v7289_v17 }
  0xac   :  { %6641 = vmatpush3.bf16.msra.mxu0 %v7290_v18  ;;  %v7343_v18 = vld [vmem:[%s9651_s1 + $0x680] sm:$0xff]  }
  0xad   :  { %6663 = vmatpush3.bf16.msra.mxu1 %v7291_v19  ;;  %6642 = vmatprep.subr.bf16.mxu0 %v7292_v20 }
  0xae   :  { %6664 = vmatprep.subr.bf16.mxu1 %v7293_v21  ;;  %v27_v21 = vld [vmem:[%s9652_s0 + $0x60] sm:$0xff] }
  0xb0   :  { %6643 = vmatpush3.bf16.msra.mxu0 %v7294_v22  ;;  %v59_v22 = vld [vmem:[%s9652_s0 + $0x160] sm:$0xff] }
  0xb1   :  { %6665 = vmatpush3.bf16.msra.mxu1 %v7295_v23  ;;  %6644 = vmatprep.subr.bf16.mxu0 %v7296_v24  ;;  %v28_v23 = vld [vmem:[%s9652_s0 + $0x68] sm:$0xff] }
  0xb2   :  { %6666 = vmatprep.subr.bf16.mxu1 %v7297_v25  ;;  %v5855_v25 = vcombine.low %v27_v21, %v59_v22 }
  0xb4   :  { %6645 = vmatpush3.bf16.msra.mxu0 %v7298_v26  ;;  %v5856_v26 = vcombine.high %v27_v21, %v59_v22  ;;  %v7388_v21 = vld [vmem:[%s9651_s1 + $0x860] sm:$0xff]  }
  0xb5   :  { %6667 = vmatpush3.bf16.msra.mxu1 %v7299_v27  ;;  %6646 = vmatprep.subr.bf16.mxu0 %v7300_v28  ;;  %v60_v27 = vld [vmem:[%s9652_s0 + $0x168] sm:$0xff]  ;;  %v7389_v22 = vld [vmem:[%s9651_s1 + $0x8e0] sm:$0xff]  }
  0xb6   :  { %6668 = vmatprep.subr.bf16.mxu1 %v7301_v29  ;;  %v5857_v28 = vcombine.low %v28_v23, %v60_v27  ;;  %v5858_v29 = vcombine.high %v28_v23, %v60_v27  ;;  %v7390_v23 = vld [vmem:[%s9651_s1 + $0x820] sm:$0xff]   ;;  %v7394_v27 = vld [vmem:[%s9651_s1 + $0x818] sm:$0xff]  }
  0xb8   :  { %6647 = vmatpush3.bf16.msra.mxu0 %v7302_v30  ;;  %v7344_v30 = vld [vmem:[%s9651_s1 + $0x778] sm:$0xff]  }
  0xb9   :  { %6669 = vmatpush3.bf16.msra.mxu1 %v7303_v31  ;;  %6648 = vmatprep.subr.bf16.mxu0 %v7304_v32  ;;  %v7345_v31 = vld [vmem:[%s9651_s1 + $0x7f8] sm:$0xff]  }
  0xba   :  { %6670 = vmatprep.subr.bf16.mxu1 %v7305_v33  ;;  %v7346_v32 = vld [vmem:[%s9651_s1 + $0x738] sm:$0xff]  }
  0xbb   :  { %v7347_v33 = vld [vmem:[%s9651_s1 + $0x7b8] sm:$0xff]  }
  0xbc   :  { %6649 = vmatpush3.bf16.msra.mxu0 %v7306_v34  ;;  %v5830_v34 = vld [vmem:[%s9653_s2] ss:$0 sm:$0xff] }
  0xbd   :  { %6671 = vmatpush3.bf16.msra.mxu1 %v7307_v35  ;;  %6650 = vmatprep.subr.bf16.mxu0 %v7308_v36  ;;  %v7348_v36 = vld [vmem:[%s9651_s1 + $0x770] sm:$0xff]  }
  0xbe   :  { %6672 = vmatprep.subr.bf16.mxu1 %v7309_v37  ;;  %v7349_v37 = vld [vmem:[%s9651_s1 + $0x7f0] sm:$0xff]  }
  0xc0   :  { %6651 = vmatpush3.bf16.msra.mxu0 %v7310_v38 }
  0xc1   :  { %6673 = vmatpush3.bf16.msra.mxu1 %v7311_v39  ;;  %6680 = vmatprep.subr.bf16.mxu0 %v7312_v48  ;;  %v7350_v39 = vld [vmem:[%s9651_s1 + $0x730] sm:$0xff]   ;;  %v7359_v48 = vld [vmem:[%s9651_s1 + $0x7a0] sm:$0xff]  }
  0xc2   :  { %6702 = vmatprep.subr.bf16.mxu1 %v7313_v49  ;;  %v7360_v49 = vld [vmem:[%s9651_s1 + $0x758] sm:$0xff]  }
  0xc3   :  { %4945 = vmatmul.mubr.bf16.vlgmr.msra.gmra.mxu0 %v5851_v44  ;;  %v7355_v44 = vld [vmem:[%s9651_s1 + $0x7a8] sm:$0xff]  }
  0xc4   :  { %4986 = vmatmul.mubr.bf16.vlgmr.msra.gmra.mxu1 %v5853_v46  ;;  %6681 = vmatpush3.bf16.msra.mxu0 %v7314_v50  ;;  %v7357_v46 = vld [vmem:[%s9651_s1 + $0x7e0] sm:$0xff]   ;;  %v7361_v50 = vld [vmem:[%s9651_s1 + $0x7d8] sm:$0xff]  }
  0xc5   :  { %6703 = vmatpush3.bf16.msra.mxu1 %v7315_v51  ;;  %6682 = vmatprep.subr.bf16.mxu0 %v7316_v52  ;;  %v7362_v51 = vld [vmem:[%s9651_s1 + $0x718] sm:$0xff]  }
  0xc6   :  { %6704 = vmatprep.subr.bf16.mxu1 %v7317_v53  ;;  %5026 = vmatprep.mubr.bf16.mxu0 %v5856_v26  ;;  %v7363_v52 = vld [vmem:[%s9651_s1 + $0x798] sm:$0xff]   ;;  %v7364_v53 = vld [vmem:[%s9651_s1 + $0x750] sm:$0xff]  }
  0xc7   :  { %5067 = vmatprep.mubr.bf16.mxu1 %v5858_v29  ;;  %v7393_v26 = vld [vmem:[%s9651_s1 + $0x8d8] sm:$0xff]   ;;  %v7396_v29 = vld [vmem:[%s9651_s1 + $0x850] sm:$0xff]  }
  0xc8   :  { %6683 = vmatpush3.bf16.msra.mxu0 %v7318_v54  ;;  %v7365_v54 = vld [vmem:[%s9651_s1 + $0x7d0] sm:$0xff]  }
  0xc9   :  { %6705 = vmatpush3.bf16.msra.mxu1 %v7319_v55  ;;  %6684 = vmatprep.subr.bf16.mxu0 %v7320_v56  ;;  %v7366_v55 = vld [vmem:[%s9651_s1 + $0x710] sm:$0xff]  }
  0xca   :  { %6706 = vmatprep.subr.bf16.mxu1 %v7321_v57  ;;  %v7367_v56 = vld [vmem:[%s9651_s1 + $0x790] sm:$0xff]   ;;  %v7368_v57 = vld [vmem:[%s9651_s1 + $0x748] sm:$0xff]  }
  0xcc   :  { %6685 = vmatpush3.bf16.msra.mxu0 %v7322_v58  ;;  %v7369_v58 = vld [vmem:[%s9651_s1 + $0x7c8] sm:$0xff]  }
  0xcd   :  { %6707 = vmatpush3.bf16.msra.mxu1 %v7323_v59  ;;  %6686 = vmatprep.subr.bf16.mxu0 %v7324_v60  ;;  %v7370_v59 = vld [vmem:[%s9651_s1 + $0x708] sm:$0xff]  }
  0xce   :  { %6708 = vmatprep.subr.bf16.mxu1 %v7325_v61  ;;  %v7371_v60 = vld [vmem:[%s9651_s1 + $0x788] sm:$0xff]   ;;  %v7372_v61 = vld [vmem:[%s9651_s1 + $0x740] sm:$0xff]  }
  0xd0   :  { %6687 = vmatpush3.bf16.msra.mxu0 %v7326_v62  ;;  %v7373_v62 = vld [vmem:[%s9651_s1 + $0x7c0] sm:$0xff]  }
  0xd1   :  { %6709 = vmatpush3.bf16.msra.mxu1 %v7327_v63  ;;  %6688 = vmatprep.subr.bf16.mxu0 %v7328_v0  ;;  %v7374_v63 = vld [vmem:[%s9651_s1 + $0x700] sm:$0xff]  }
  0xd2   :  { %6710 = vmatprep.subr.bf16.mxu1 %v7329_v1  ;;  %v7375_v0 = vld [vmem:[%s9651_s1 + $0x780] sm:$0xff]   ;;  %v29_v1 = vld [vmem:[%s9652_s0 + $0x70] sm:$0xff] }
  0xd4   :  { %6689 = vmatpush3.bf16.msra.mxu0 %v7330_v2  ;;  %v61_v2 = vld [vmem:[%s9652_s0 + $0x170] sm:$0xff] }
  0xd5   :  { %6711 = vmatpush3.bf16.msra.mxu1 %v7331_v3  ;;  %6690 = vmatprep.subr.bf16.mxu0 %v7332_v4  ;;  %v30_v3 = vld [vmem:[%s9652_s0 + $0x78] sm:$0xff] }
  0xd6   :  { %6712 = vmatprep.subr.bf16.mxu1 %v7333_v5  ;;  %v62_v4 = vld [vmem:[%s9652_s0 + $0x178] sm:$0xff]  ;;  %v5859_v5 = vcombine.low %v29_v1, %v61_v2 }
  0xd8   :  { %6691 = vmatpush3.bf16.msra.mxu0 %v7334_v6  ;;  %v5860_v6 = vcombine.high %v29_v1, %v61_v2  ;;  %v7423_v1 = vld [vmem:[%s9651_s1 + $0x9a0] sm:$0xff]   ;;  %v7424_v2 = vld [vmem:[%s9651_s1 + $0x958] sm:$0xff]  }
  0xd9   :  { %6713 = vmatpush3.bf16.msra.mxu1 %v7335_v7  ;;  %6692 = vmatprep.subr.bf16.mxu0 %v7336_v8  ;;  %v5861_v7 = vcombine.low %v30_v3, %v62_v4  ;;  %v5862_v8 = vcombine.high %v30_v3, %v62_v4  ;;  %v7425_v3 = vld [vmem:[%s9651_s1 + $0x9d8] sm:$0xff]  }
  0xda   :  { %6714 = vmatprep.subr.bf16.mxu1 %v7337_v9  ;;  %v7376_v9 = vld [vmem:[%s9651_s1 + $0x878] sm:$0xff]  }
  0xdb   :  { %v7426_v4 = vld [vmem:[%s9651_s1 + $0x918] sm:$0xff]  }
  0xdc   :  { %6693 = vmatpush3.bf16.msra.mxu0 %v7338_v10  ;;  %v7377_v10 = vld [vmem:[%s9651_s1 + $0x8f8] sm:$0xff]  }
  0xdd   :  { %6715 = vmatpush3.bf16.msra.mxu1 %v7339_v11  ;;  %6694 = vmatprep.subr.bf16.mxu0 %v7340_v12  ;;  %v7378_v11 = vld [vmem:[%s9651_s1 + $0x838] sm:$0xff]  }
  0xde   :  { %6716 = vmatprep.subr.bf16.mxu1 %v7341_v14  ;;  %v7379_v12 = vld [vmem:[%s9651_s1 + $0x8b8] sm:$0xff]   ;;  %v7381_v14 = vld [vmem:[%s9651_s1 + $0x8f0] sm:$0xff]  }
  0xe0   :  { %6695 = vmatpush3.bf16.msra.mxu0 %v7342_v16  ;;  %v7383_v16 = vld [vmem:[%s9651_s1 + $0x8b0] sm:$0xff]  }
  0xe1   :  { %6717 = vmatpush3.bf16.msra.mxu1 %v7343_v18  ;;  %6724 = vmatprep.subr.bf16.mxu0 %v7344_v30  ;;  %v7385_v18 = vld [vmem:[%s9651_s1 + $0x8e8] sm:$0xff]   ;;  %v7397_v30 = vld [vmem:[%s9651_s1 + $0x8d0] sm:$0xff]  }
  0xe2   :  { %6746 = vmatprep.subr.bf16.mxu1 %v7345_v31  ;;  %v7398_v31 = vld [vmem:[%s9651_s1 + $0x810] sm:$0xff]  }
  0xe3   :  { %v6432_v13 = vpop.f32.mrf.mxu0  ;;  %5027 = vmatmul.mubr.bf16.vlgmr.msra.gmra.mxu0 %v5855_v25  ;;  %v7392_v25 = vld [vmem:[%s9651_s1 + $0x858] sm:$0xff]  }
  0xe4   :  { %v6454_v15 = vpop.f32.mrf.mxu1  ;;  %5068 = vmatmul.mubr.bf16.vlgmr.msra.gmra.mxu1 %v5857_v28  ;;  %6725 = vmatpush3.bf16.msra.mxu0 %v7346_v32  ;;  %v7395_v28 = vld [vmem:[%s9651_s1 + $0x898] sm:$0xff]   ;;  %v7399_v32 = vld [vmem:[%s9651_s1 + $0x890] sm:$0xff]  }
  0xe5   :  { %v6433_v17 = vpop.f32.mrf.mxu0  ;;  %6747 = vmatpush3.bf16.msra.mxu1 %v7347_v33  ;;  %6726 = vmatprep.subr.bf16.mxu0 %v7348_v36  ;;  %v7400_v33 = vld [vmem:[%s9651_s1 + $0x848] sm:$0xff]  }
  0xe6   :  { %v6434_v19 = vadd.f32 %v6433_v17, %v6432_v13  ;;  %v6455_v20 = vpop.f32.mrf.mxu1  ;;  %6748 = vmatprep.subr.bf16.mxu1 %v7349_v37  ;;  %5108 = vmatprep.mubr.bf16.mxu0 %v5860_v6  ;;  %v7380_v13 = vld [vmem:[%s9651_s1 + $0x870] sm:$0xff]   ;;  %v7384_v17 = vld [vmem:[%s9651_s1 + $0x868] sm:$0xff]   ;;  %v7404_v37 = vld [vmem:[%s9651_s1 + $0x840] sm:$0xff]  }
  0xe7   :  { %v6456_v24 = vadd.f32 %v6455_v20, %v6454_v15  ;;  %5149 = vmatprep.mubr.bf16.mxu1 %v5862_v8  ;;  %v7382_v15 = vld [vmem:[%s9651_s1 + $0x830] sm:$0xff]   ;;  %v7387_v20 = vld [vmem:[%s9651_s1 + $0x8a8] sm:$0xff]  }
  0xe8   :  { %v4537_v35 = vadd.f32 %v6434_v19, %v5830_v34  ;;  %6727 = vmatpush3.bf16.msra.mxu0 %v7350_v39  ;;  %v7386_v19 = vld [vmem:[%s9651_s1 + $0x828] sm:$0xff]   ;;  %v7405_v39 = vld [vmem:[%s9651_s1 + $0x8c0] sm:$0xff]   ;;  %v7428_v6 = vld [vmem:[%s9651_s1 + $0x950] sm:$0xff]  }
  0xe9   :  { %6749 = vmatpush3.bf16.msra.mxu1 %v7351_v40  ;;  %6728 = vmatprep.subr.bf16.mxu0 %v7352_v41  ;;  %v7401_v34 = vld [vmem:[%s9651_s1 + $0x8c8] sm:$0xff]   ;;  %v7406_v40 = vld [vmem:[%s9651_s1 + $0x800] sm:$0xff]   ;;  %v7430_v8 = vld [vmem:[%s9651_s1 + $0x910] sm:$0xff]  }
  0xea   :  { %v8430_v38 = vadd.f32 %v6456_v24, %v4537_v35  ;;  %6750 = vmatprep.subr.bf16.mxu1 %v7353_v42  ;;  %v7391_v24 = vld [vmem:[%s9651_s1 + $0x8a0] sm:$0xff]   ;;  %v7402_v35 = vld [vmem:[%s9651_s1 + $0x808] sm:$0xff]  }
  0xeb   :  { %v7403_v36 = vld [vmem:[%s9651_s1 + $0x888] sm:$0xff]   ;;  %v7407_v41 = vld [vmem:[%s9651_s1 + $0x880] sm:$0xff]  }
  0xec   :  { %6729 = vmatpush3.bf16.msra.mxu0 %v7354_v43  ;;  %v31_v42 = vld [vmem:[%s9652_s0 + $0x80] sm:$0xff] }
  0xed   :  { %6751 = vmatpush3.bf16.msra.mxu1 %v7355_v44  ;;  %6730 = vmatprep.subr.bf16.mxu0 %v7356_v45  ;;  %v63_v43 = vld [vmem:[%s9652_s0 + $0x180] sm:$0xff]  ;;  %v32_v44 = vld [vmem:[%s9652_s0 + $0x88] sm:$0xff] }
  0xee   :  { %6752 = vmatprep.subr.bf16.mxu1 %v7357_v46  ;;  %v5863_v45 = vcombine.low %v31_v42, %v63_v43  ;;  %v5864_v46 = vcombine.high %v31_v42, %v63_v43  ;;  %v7455_v42 = vld [vmem:[%s9651_s1 + $0xaa0] sm:$0xff]   ;;  %v7456_v43 = vld [vmem:[%s9651_s1 + $0xa58] sm:$0xff]  }
  0xf0   :  { %6731 = vmatpush3.bf16.msra.mxu0 %v7358_v47  ;;  %v64_v47 = vld [vmem:[%s9652_s0 + $0x188] sm:$0xff] }
  0xf1   :  { %6753 = vmatpush3.bf16.msra.mxu1 %v7359_v48  ;;  %6732 = vmatprep.subr.bf16.mxu0 %v7360_v49  ;;  %v5865_v48 = vcombine.low %v32_v44, %v64_v47  ;;  %v5866_v49 = vcombine.high %v32_v44, %v64_v47  ;;  %v7457_v44 = vld [vmem:[%s9651_s1 + $0xad8] sm:$0xff]   ;;  %v7460_v47 = vld [vmem:[%s9651_s1 + $0xa50] sm:$0xff]  }
  0xf2   :  { %6754 = vmatprep.subr.bf16.mxu1 %v7361_v50  ;;  %v7408_v50 = vld [vmem:[%s9651_s1 + $0x978] sm:$0xff]  }
  0xf4   :  { %6733 = vmatpush3.bf16.msra.mxu0 %v7362_v51  ;;  %v7409_v51 = vld [vmem:[%s9651_s1 + $0x9f8] sm:$0xff]  }
  0xf5   :  { %6755 = vmatpush3.bf16.msra.mxu1 %v7363_v52  ;;  %6734 = vmatprep.subr.bf16.mxu0 %v7364_v53  ;;  %v7410_v52 = vld [vmem:[%s9651_s1 + $0x938] sm:$0xff]  }
  0xf6   :  { %6756 = vmatprep.subr.bf16.mxu1 %v7365_v54  ;;  %v7411_v53 = vld [vmem:[%s9651_s1 + $0x9b8] sm:$0xff]   ;;  %v7412_v54 = vld [vmem:[%s9651_s1 + $0x970] sm:$0xff]  }
  0xf8   :  { %6735 = vmatpush3.bf16.msra.mxu0 %v7366_v55  ;;  %v7413_v55 = vld [vmem:[%s9651_s1 + $0x9f0] sm:$0xff]  }
  0xf9   :  { %6757 = vmatpush3.bf16.msra.mxu1 %v7367_v56  ;;  %6736 = vmatprep.subr.bf16.mxu0 %v7368_v57  ;;  %v7414_v56 = vld [vmem:[%s9651_s1 + $0x930] sm:$0xff]  }
  0xfa   :  { %6758 = vmatprep.subr.bf16.mxu1 %v7369_v58  ;;  %v7415_v57 = vld [vmem:[%s9651_s1 + $0x9b0] sm:$0xff]   ;;  %v7416_v58 = vld [vmem:[%s9651_s1 + $0x968] sm:$0xff]  }
  0xfc   :  { %6737 = vmatpush3.bf16.msra.mxu0 %v7370_v59  ;;  %v7417_v59 = vld [vmem:[%s9651_s1 + $0x9e8] sm:$0xff]  }
  0xfd   :  { %6759 = vmatpush3.bf16.msra.mxu1 %v7371_v60  ;;  %6738 = vmatprep.subr.bf16.mxu0 %v7372_v61  ;;  %v7418_v60 = vld [vmem:[%s9651_s1 + $0x928] sm:$0xff]  }
  0xfe   :  { %6760 = vmatprep.subr.bf16.mxu1 %v7373_v62  ;;  %v7419_v61 = vld [vmem:[%s9651_s1 + $0x9a8] sm:$0xff]   ;;  %v7420_v62 = vld [vmem:[%s9651_s1 + $0x960] sm:$0xff]  }
 0x100   :  { %6739 = vmatpush3.bf16.msra.mxu0 %v7374_v63  ;;  %v7421_v63 = vld [vmem:[%s9651_s1 + $0x9e0] sm:$0xff]  }
 0x101   :  { %6761 = vmatpush3.bf16.msra.mxu1 %v7375_v0  ;;  %6768 = vmatprep.subr.bf16.mxu0 %v7376_v9  ;;  %v7422_v0 = vld [vmem:[%s9651_s1 + $0x920] sm:$0xff]   ;;  %v7431_v9 = vld [vmem:[%s9651_s1 + $0x990] sm:$0xff]  }
 0x102   :  { %6790 = vmatprep.subr.bf16.mxu1 %v7377_v10  ;;  %v7432_v10 = vld [vmem:[%s9651_s1 + $0x948] sm:$0xff]  }
 0x103   :  { %5109 = vmatmul.mubr.bf16.vlgmr.msra.gmra.mxu0 %v5859_v5  ;;  %v7427_v5 = vld [vmem:[%s9651_s1 + $0x998] sm:$0xff]  }
 0x104   :  { %5150 = vmatmul.mubr.bf16.vlgmr.msra.gmra.mxu1 %v5861_v7  ;;  %6769 = vmatpush3.bf16.msra.mxu0 %v7378_v11  ;;  %v7429_v7 = vld [vmem:[%s9651_s1 + $0x9d0] sm:$0xff]   ;;  %v7433_v11 = vld [vmem:[%s9651_s1 + $0x9c8] sm:$0xff]  }
 0x105   :  { %6791 = vmatpush3.bf16.msra.mxu1 %v7379_v12  ;;  %6770 = vmatprep.subr.bf16.mxu0 %v7380_v13  ;;  %v7434_v12 = vld [vmem:[%s9651_s1 + $0x908] sm:$0xff]  }
 0x106   :  { %6792 = vmatprep.subr.bf16.mxu1 %v7381_v14  ;;  %5190 = vmatprep.mubr.bf16.mxu0 %v5864_v46  ;;  %v7435_v13 = vld [vmem:[%s9651_s1 + $0x988] sm:$0xff]   ;;  %v7436_v14 = vld [vmem:[%s9651_s1 + $0x940] sm:$0xff]   ;;  %v7459_v46 = vld [vmem:[%s9651_s1 + $0xa98] sm:$0xff]  }
 0x107   :  { %5231 = vmatprep.mubr.bf16.mxu1 %v5866_v49  ;;  %v7462_v49 = vld [vmem:[%s9651_s1 + $0xa10] sm:$0xff]  }
 0x108   :  { %6771 = vmatpush3.bf16.msra.mxu0 %v7382_v15  ;;  %v7437_v15 = vld [vmem:[%s9651_s1 + $0x9c0] sm:$0xff]  }
 0x109   :  { %6793 = vmatpush3.bf16.msra.mxu1 %v7383_v16  ;;  %6772 = vmatprep.subr.bf16.mxu0 %v7384_v17  ;;  %v7438_v16 = vld [vmem:[%s9651_s1 + $0x900] sm:$0xff]  }
 0x10a   :  { %6794 = vmatprep.subr.bf16.mxu1 %v7385_v18  ;;  %v7439_v17 = vld [vmem:[%s9651_s1 + $0x980] sm:$0xff]   ;;  %v33_v18 = vld [vmem:[%s9652_s0 + $0x90] sm:$0xff] }
 0x10c   :  { %6773 = vmatpush3.bf16.msra.mxu0 %v7386_v19  ;;  %v65_v19 = vld [vmem:[%s9652_s0 + $0x190] sm:$0xff] }
 0x10d   :  { %6795 = vmatpush3.bf16.msra.mxu1 %v7387_v20  ;;  %6774 = vmatprep.subr.bf16.mxu0 %v7388_v21  ;;  %v5867_v20 = vcombine.low %v33_v18, %v65_v19  ;;  %v5868_v21 = vcombine.high %v33_v18, %v65_v19  ;;  %v7487_v18 = vld [vmem:[%s9651_s1 + $0xba0] sm:$0xff]   ;;  %v7488_v19 = vld [vmem:[%s9651_s1 + $0xb58] sm:$0xff]  }
 0x10e   :  { %6796 = vmatprep.subr.bf16.mxu1 %v7389_v22  ;;  %v34_v22 = vld [vmem:[%s9652_s0 + $0x98] sm:$0xff] }
 0x110   :  { %6775 = vmatpush3.bf16.msra.mxu0 %v7390_v23  ;;  %v66_v23 = vld [vmem:[%s9652_s0 + $0x198] sm:$0xff] }
 0x111   :  { %6797 = vmatpush3.bf16.msra.mxu1 %v7391_v24  ;;  %6776 = vmatprep.subr.bf16.mxu0 %v7392_v25  ;;  %v5869_v24 = vcombine.low %v34_v22, %v66_v23  ;;  %v5870_v25 = vcombine.high %v34_v22, %v66_v23  ;;  %v7491_v22 = vld [vmem:[%s9651_s1 + $0xb98] sm:$0xff]   ;;  %v7492_v23 = vld [vmem:[%s9651_s1 + $0xb50] sm:$0xff]  }
 0x112   :  { %6798 = vmatprep.subr.bf16.mxu1 %v7393_v26  ;;  %v7440_v26 = vld [vmem:[%s9651_s1 + $0xa78] sm:$0xff]  }
 0x114   :  { %6777 = vmatpush3.bf16.msra.mxu0 %v7394_v27  ;;  %v7441_v27 = vld [vmem:[%s9651_s1 + $0xaf8] sm:$0xff]  }
 0x115   :  { %6799 = vmatpush3.bf16.msra.mxu1 %v7395_v28  ;;  %6778 = vmatprep.subr.bf16.mxu0 %v7396_v29  ;;  %v7442_v28 = vld [vmem:[%s9651_s1 + $0xa38] sm:$0xff]  }
 0x116   :  { %6800 = vmatprep.subr.bf16.mxu1 %v7397_v30  ;;  %v7443_v29 = vld [vmem:[%s9651_s1 + $0xab8] sm:$0xff]   ;;  %v7444_v30 = vld [vmem:[%s9651_s1 + $0xa70] sm:$0xff]  }
 0x118   :  { %6779 = vmatpush3.bf16.msra.mxu0 %v7398_v31  ;;  %v7445_v31 = vld [vmem:[%s9651_s1 + $0xaf0] sm:$0xff]  }
 0x119   :  { %6801 = vmatpush3.bf16.msra.mxu1 %v7399_v32  ;;  %6780 = vmatprep.subr.bf16.mxu0 %v7400_v33  ;;  %v7446_v32 = vld [vmem:[%s9651_s1 + $0xa30] sm:$0xff]  }
 0x11a   :  { %6802 = vmatprep.subr.bf16.mxu1 %v7401_v34  ;;  %v7447_v33 = vld [vmem:[%s9651_s1 + $0xab0] sm:$0xff]   ;;  %v7448_v34 = vld [vmem:[%s9651_s1 + $0xa68] sm:$0xff]  }
 0x11c   :  { %6781 = vmatpush3.bf16.msra.mxu0 %v7402_v35  ;;  %v7449_v35 = vld [vmem:[%s9651_s1 + $0xae8] sm:$0xff]  }
 0x11d   :  { %6803 = vmatpush3.bf16.msra.mxu1 %v7403_v36  ;;  %6782 = vmatprep.subr.bf16.mxu0 %v7404_v37  ;;  %v7450_v36 = vld [vmem:[%s9651_s1 + $0xa28] sm:$0xff]  }
 0x11e   :  { %6804 = vmatprep.subr.bf16.mxu1 %v7405_v39  ;;  %v7451_v37 = vld [vmem:[%s9651_s1 + $0xaa8] sm:$0xff]   ;;  %v7452_v39 = vld [vmem:[%s9651_s1 + $0xa60] sm:$0xff]  }
 0x120   :  { %6783 = vmatpush3.bf16.msra.mxu0 %v7406_v40  ;;  %v7453_v40 = vld [vmem:[%s9651_s1 + $0xae0] sm:$0xff]  }
 0x121   :  { %6805 = vmatpush3.bf16.msra.mxu1 %v7407_v41  ;;  %6812 = vmatprep.subr.bf16.mxu0 %v7408_v50  ;;  %v7454_v41 = vld [vmem:[%s9651_s1 + $0xa20] sm:$0xff]   ;;  %v7463_v50 = vld [vmem:[%s9651_s1 + $0xa90] sm:$0xff]  }
 0x122   :  { %6834 = vmatprep.subr.bf16.mxu1 %v7409_v51  ;;  %v7464_v51 = vld [vmem:[%s9651_s1 + $0xa48] sm:$0xff]  }
 0x123   :  { %5191 = vmatmul.mubr.bf16.vlgmr.msra.gmra.mxu0 %v5863_v45  ;;  %v7458_v45 = vld [vmem:[%s9651_s1 + $0xa18] sm:$0xff]  }
 0x124   :  { %5232 = vmatmul.mubr.bf16.vlgmr.msra.gmra.mxu1 %v5865_v48  ;;  %6813 = vmatpush3.bf16.msra.mxu0 %v7410_v52  ;;  %v7461_v48 = vld [vmem:[%s9651_s1 + $0xad0] sm:$0xff]   ;;  %v7465_v52 = vld [vmem:[%s9651_s1 + $0xac8] sm:$0xff]  }
 0x125   :  { %6835 = vmatpush3.bf16.msra.mxu1 %v7411_v53  ;;  %6814 = vmatprep.subr.bf16.mxu0 %v7412_v54  ;;  %v7466_v53 = vld [vmem:[%s9651_s1 + $0xa08] sm:$0xff]  }
 0x126   :  { %6836 = vmatprep.subr.bf16.mxu1 %v7413_v55  ;;  %5272 = vmatprep.mubr.bf16.mxu0 %v5868_v21  ;;  %v7467_v54 = vld [vmem:[%s9651_s1 + $0xa88] sm:$0xff]   ;;  %v7468_v55 = vld [vmem:[%s9651_s1 + $0xa40] sm:$0xff]   ;;  %v7490_v21 = vld [vmem:[%s9651_s1 + $0xb18] sm:$0xff]  }
 0x127   :  { %5313 = vmatprep.mubr.bf16.mxu1 %v5870_v25  ;;  %v7494_v25 = vld [vmem:[%s9651_s1 + $0xb10] sm:$0xff]  }
 0x128   :  { %6815 = vmatpush3.bf16.msra.mxu0 %v7414_v56  ;;  %v7469_v56 = vld [vmem:[%s9651_s1 + $0xac0] sm:$0xff]  }
 0x129   :  { %6837 = vmatpush3.bf16.msra.mxu1 %v7415_v57  ;;  %6816 = vmatprep.subr.bf16.mxu0 %v7416_v58  ;;  %v7470_v57 = vld [vmem:[%s9651_s1 + $0xa00] sm:$0xff]  }
 0x12a   :  { %6838 = vmatprep.subr.bf16.mxu1 %v7417_v59  ;;  %v7471_v58 = vld [vmem:[%s9651_s1 + $0xa80] sm:$0xff]  }
 0x12b   :  { %v35_v59 = vld [vmem:[%s9652_s0 + $0xa0] sm:$0xff] }
 0x12c   :  { %6817 = vmatpush3.bf16.msra.mxu0 %v7418_v60  ;;  %v67_v60 = vld [vmem:[%s9652_s0 + $0x1a0] sm:$0xff] }
 0x12d   :  { %6839 = vmatpush3.bf16.msra.mxu1 %v7419_v61  ;;  %6818 = vmatprep.subr.bf16.mxu0 %v7420_v62  ;;  %v36_v61 = vld [vmem:[%s9652_s0 + $0xa8] sm:$0xff] }
 0x12e   :  { %6840 = vmatprep.subr.bf16.mxu1 %v7421_v63  ;;  %v68_v62 = vld [vmem:[%s9652_s0 + $0x1a8] sm:$0xff]  ;;  %v5871_v63 = vcombine.low %v35_v59, %v67_v60 }
 0x130   :  { %6819 = vmatpush3.bf16.msra.mxu0 %v7422_v0  ;;  %v5872_v0 = vcombine.high %v35_v59, %v67_v60  ;;  %v7519_v59 = vld [vmem:[%s9651_s1 + $0xca0] sm:$0xff]   ;;  %v7520_v60 = vld [vmem:[%s9651_s1 + $0xc58] sm:$0xff]  }
 0x131   :  { %6841 = vmatpush3.bf16.msra.mxu1 %v7423_v1  ;;  %6820 = vmatprep.subr.bf16.mxu0 %v7424_v2  ;;  %v5873_v1 = vcombine.low %v36_v61, %v68_v62  ;;  %v5874_v2 = vcombine.high %v36_v61, %v68_v62  ;;  %v7521_v61 = vld [vmem:[%s9651_s1 + $0xcd8] sm:$0xff]  }
 0x132   :  { %6842 = vmatprep.subr.bf16.mxu1 %v7425_v3  ;;  %v7472_v3 = vld [vmem:[%s9651_s1 + $0xb78] sm:$0xff]  }
 0x133   :  { %v7522_v62 = vld [vmem:[%s9651_s1 + $0xc18] sm:$0xff]  }
 0x134   :  { %6821 = vmatpush3.bf16.msra.mxu0 %v7426_v4  ;;  %v7473_v4 = vld [vmem:[%s9651_s1 + $0xbf8] sm:$0xff]  }
 0x135   :  { %6843 = vmatpush3.bf16.msra.mxu1 %v7427_v5  ;;  %6822 = vmatprep.subr.bf16.mxu0 %v7428_v6  ;;  %v7474_v5 = vld [vmem:[%s9651_s1 + $0xb38] sm:$0xff]  }
 0x136   :  { %6844 = vmatprep.subr.bf16.mxu1 %v7429_v7  ;;  %v7475_v6 = vld [vmem:[%s9651_s1 + $0xbb8] sm:$0xff]   ;;  %v7476_v7 = vld [vmem:[%s9651_s1 + $0xb70] sm:$0xff]  }
 0x138   :  { %6823 = vmatpush3.bf16.msra.mxu0 %v7430_v8  ;;  %v7477_v8 = vld [vmem:[%s9651_s1 + $0xbf0] sm:$0xff]  }
 0x139   :  { %6845 = vmatpush3.bf16.msra.mxu1 %v7431_v9  ;;  %6824 = vmatprep.subr.bf16.mxu0 %v7432_v10  ;;  %v7478_v9 = vld [vmem:[%s9651_s1 + $0xb30] sm:$0xff]  }
 0x13a   :  { %6846 = vmatprep.subr.bf16.mxu1 %v7433_v11  ;;  %v7479_v10 = vld [vmem:[%s9651_s1 + $0xbb0] sm:$0xff]   ;;  %v7480_v11 = vld [vmem:[%s9651_s1 + $0xb68] sm:$0xff]  }
 0x13c   :  { %6825 = vmatpush3.bf16.msra.mxu0 %v7434_v12  ;;  %v7481_v12 = vld [vmem:[%s9651_s1 + $0xbe8] sm:$0xff]  }
 0x13d   :  { %6847 = vmatpush3.bf16.msra.mxu1 %v7435_v13  ;;  %6826 = vmatprep.subr.bf16.mxu0 %v7436_v14  ;;  %v7482_v13 = vld [vmem:[%s9651_s1 + $0xb28] sm:$0xff]  }
 0x13e   :  { %6848 = vmatprep.subr.bf16.mxu1 %v7437_v15  ;;  %v7483_v14 = vld [vmem:[%s9651_s1 + $0xba8] sm:$0xff]   ;;  %v7484_v15 = vld [vmem:[%s9651_s1 + $0xb60] sm:$0xff]  }
 0x140   :  { %6827 = vmatpush3.bf16.msra.mxu0 %v7438_v16  ;;  %v7485_v16 = vld [vmem:[%s9651_s1 + $0xbe0] sm:$0xff]  }
 0x141   :  { %6849 = vmatpush3.bf16.msra.mxu1 %v7439_v17  ;;  %6856 = vmatprep.subr.bf16.mxu0 %v7440_v26  ;;  %v7486_v17 = vld [vmem:[%s9651_s1 + $0xb20] sm:$0xff]   ;;  %v7495_v26 = vld [vmem:[%s9651_s1 + $0xb90] sm:$0xff]  }
 0x142   :  { %6878 = vmatprep.subr.bf16.mxu1 %v7441_v27  ;;  %v7496_v27 = vld [vmem:[%s9651_s1 + $0xb48] sm:$0xff]  }
 0x143   :  { %5273 = vmatmul.mubr.bf16.vlgmr.msra.gmra.mxu0 %v5867_v20  ;;  %v7489_v20 = vld [vmem:[%s9651_s1 + $0xbd8] sm:$0xff]  }
 0x144   :  { %5314 = vmatmul.mubr.bf16.vlgmr.msra.gmra.mxu1 %v5869_v24  ;;  %6857 = vmatpush3.bf16.msra.mxu0 %v7442_v28  ;;  %v7493_v24 = vld [vmem:[%s9651_s1 + $0xbd0] sm:$0xff]   ;;  %v7497_v28 = vld [vmem:[%s9651_s1 + $0xbc8] sm:$0xff]  }
 0x145   :  { %6879 = vmatpush3.bf16.msra.mxu1 %v7443_v29  ;;  %6858 = vmatprep.subr.bf16.mxu0 %v7444_v30  ;;  %v7498_v29 = vld [vmem:[%s9651_s1 + $0xb08] sm:$0xff]  }
 0x146   :  { %6880 = vmatprep.subr.bf16.mxu1 %v7445_v31  ;;  %5354 = vmatprep.mubr.bf16.mxu0 %v5872_v0  ;;  %v7499_v30 = vld [vmem:[%s9651_s1 + $0xb88] sm:$0xff]   ;;  %v7500_v31 = vld [vmem:[%s9651_s1 + $0xb40] sm:$0xff]   ;;  %v7524_v0 = vld [vmem:[%s9651_s1 + $0xc50] sm:$0xff]  }
 0x147   :  { %5395 = vmatprep.mubr.bf16.mxu1 %v5874_v2  ;;  %v7526_v2 = vld [vmem:[%s9651_s1 + $0xc10] sm:$0xff]  }
 0x148   :  { %6859 = vmatpush3.bf16.msra.mxu0 %v7446_v32  ;;  %v7501_v32 = vld [vmem:[%s9651_s1 + $0xbc0] sm:$0xff]  }
 0x149   :  { %6881 = vmatpush3.bf16.msra.mxu1 %v7447_v33  ;;  %6860 = vmatprep.subr.bf16.mxu0 %v7448_v34  ;;  %v7502_v33 = vld [vmem:[%s9651_s1 + $0xb00] sm:$0xff]  }
 0x14a   :  { %6882 = vmatprep.subr.bf16.mxu1 %v7449_v35  ;;  %v7503_v34 = vld [vmem:[%s9651_s1 + $0xb80] sm:$0xff]   ;;  %v37_v35 = vld [vmem:[%s9652_s0 + $0xb0] sm:$0xff] }
 0x14c   :  { %6861 = vmatpush3.bf16.msra.mxu0 %v7450_v36  ;;  %v69_v36 = vld [vmem:[%s9652_s0 + $0x1b0] sm:$0xff] }
 0x14d   :  { %6883 = vmatpush3.bf16.msra.mxu1 %v7451_v37  ;;  %6862 = vmatprep.subr.bf16.mxu0 %v7452_v39  ;;  %v38_v37 = vld [vmem:[%s9652_s0 + $0xb8] sm:$0xff]  ;;  %v5875_v39 = vcombine.low %v37_v35, %v69_v36 }
 0x14e   :  { %6884 = vmatprep.subr.bf16.mxu1 %v7453_v40  ;;  %v5876_v40 = vcombine.high %v37_v35, %v69_v36  ;;  %v7551_v35 = vld [vmem:[%s9651_s1 + $0xda0] sm:$0xff]   ;;  %v7552_v36 = vld [vmem:[%s9651_s1 + $0xd58] sm:$0xff]  }
 0x150   :  { %6863 = vmatpush3.bf16.msra.mxu0 %v7454_v41  ;;  %v70_v41 = vld [vmem:[%s9652_s0 + $0x1b8] sm:$0xff] }
 0x151   :  { %6885 = vmatpush3.bf16.msra.mxu1 %v7455_v42  ;;  %6864 = vmatprep.subr.bf16.mxu0 %v7456_v43  ;;  %v5877_v42 = vcombine.low %v38_v37, %v70_v41  ;;  %v5878_v43 = vcombine.high %v38_v37, %v70_v41  ;;  %v7553_v37 = vld [vmem:[%s9651_s1 + $0xdd8] sm:$0xff]   ;;  %v7556_v41 = vld [vmem:[%s9651_s1 + $0xd50] sm:$0xff]  }
 0x152   :  { %6886 = vmatprep.subr.bf16.mxu1 %v7457_v44  ;;  %v7504_v44 = vld [vmem:[%s9651_s1 + $0xc78] sm:$0xff]  }
 0x154   :  { %6865 = vmatpush3.bf16.msra.mxu0 %v7458_v45  ;;  %v7505_v45 = vld [vmem:[%s9651_s1 + $0xcf8] sm:$0xff]  }
 0x155   :  { %6887 = vmatpush3.bf16.msra.mxu1 %v7459_v46  ;;  %6866 = vmatprep.subr.bf16.mxu0 %v7460_v47  ;;  %v7506_v46 = vld [vmem:[%s9651_s1 + $0xc38] sm:$0xff]  }
 0x156   :  { %6888 = vmatprep.subr.bf16.mxu1 %v7461_v48  ;;  %v7507_v47 = vld [vmem:[%s9651_s1 + $0xcb8] sm:$0xff]   ;;  %v7508_v48 = vld [vmem:[%s9651_s1 + $0xc70] sm:$0xff]  }
 0x158   :  { %6867 = vmatpush3.bf16.msra.mxu0 %v7462_v49  ;;  %v7509_v49 = vld [vmem:[%s9651_s1 + $0xcf0] sm:$0xff]  }
 0x159   :  { %6889 = vmatpush3.bf16.msra.mxu1 %v7463_v50  ;;  %6868 = vmatprep.subr.bf16.mxu0 %v7464_v51  ;;  %v7510_v50 = vld [vmem:[%s9651_s1 + $0xc30] sm:$0xff]  }
 0x15a   :  { %6890 = vmatprep.subr.bf16.mxu1 %v7465_v52  ;;  %v7511_v51 = vld [vmem:[%s9651_s1 + $0xcb0] sm:$0xff]   ;;  %v7512_v52 = vld [vmem:[%s9651_s1 + $0xc68] sm:$0xff]  }
 0x15c   :  { %6869 = vmatpush3.bf16.msra.mxu0 %v7466_v53  ;;  %v7513_v53 = vld [vmem:[%s9651_s1 + $0xce8] sm:$0xff]  }
 0x15d   :  { %6891 = vmatpush3.bf16.msra.mxu1 %v7467_v54  ;;  %6870 = vmatprep.subr.bf16.mxu0 %v7468_v55  ;;  %v7514_v54 = vld [vmem:[%s9651_s1 + $0xc28] sm:$0xff]  }
 0x15e   :  { %6892 = vmatprep.subr.bf16.mxu1 %v7469_v56  ;;  %v7515_v55 = vld [vmem:[%s9651_s1 + $0xca8] sm:$0xff]   ;;  %v7516_v56 = vld [vmem:[%s9651_s1 + $0xc60] sm:$0xff]  }
 0x160   :  { %6871 = vmatpush3.bf16.msra.mxu0 %v7470_v57  ;;  %v7517_v57 = vld [vmem:[%s9651_s1 + $0xce0] sm:$0xff]  }
 0x161   :  { %6893 = vmatpush3.bf16.msra.mxu1 %v7471_v58  ;;  %6900 = vmatprep.subr.bf16.mxu0 %v7472_v3  ;;  %v7518_v58 = vld [vmem:[%s9651_s1 + $0xc20] sm:$0xff]   ;;  %v7527_v3 = vld [vmem:[%s9651_s1 + $0xc90] sm:$0xff]  }
 0x162   :  { %6922 = vmatprep.subr.bf16.mxu1 %v7473_v4  ;;  %v7528_v4 = vld [vmem:[%s9651_s1 + $0xc48] sm:$0xff]  }
 0x163   :  { %5355 = vmatmul.mubr.bf16.vlgmr.msra.gmra.mxu0 %v5871_v63  ;;  %v7523_v63 = vld [vmem:[%s9651_s1 + $0xc98] sm:$0xff]  }
 0x164   :  { %5396 = vmatmul.mubr.bf16.vlgmr.msra.gmra.mxu1 %v5873_v1  ;;  %6901 = vmatpush3.bf16.msra.mxu0 %v7474_v5  ;;  %v7525_v1 = vld [vmem:[%s9651_s1 + $0xcd0] sm:$0xff]   ;;  %v7529_v5 = vld [vmem:[%s9651_s1 + $0xcc8] sm:$0xff]  }
 0x165   :  { %6923 = vmatpush3.bf16.msra.mxu1 %v7475_v6  ;;  %6902 = vmatprep.subr.bf16.mxu0 %v7476_v7  ;;  %v7530_v6 = vld [vmem:[%s9651_s1 + $0xc08] sm:$0xff]  }
 0x166   :  { %6924 = vmatprep.subr.bf16.mxu1 %v7477_v8  ;;  %5436 = vmatprep.mubr.bf16.mxu0 %v5876_v40  ;;  %v7531_v7 = vld [vmem:[%s9651_s1 + $0xc88] sm:$0xff]   ;;  %v7532_v8 = vld [vmem:[%s9651_s1 + $0xc40] sm:$0xff]   ;;  %v7555_v40 = vld [vmem:[%s9651_s1 + $0xd98] sm:$0xff]  }
 0x167   :  { %5477 = vmatprep.mubr.bf16.mxu1 %v5878_v43  ;;  %v7558_v43 = vld [vmem:[%s9651_s1 + $0xd10] sm:$0xff]  }
 0x168   :  { %6903 = vmatpush3.bf16.msra.mxu0 %v7478_v9  ;;  %v7533_v9 = vld [vmem:[%s9651_s1 + $0xcc0] sm:$0xff]  }
 0x169   :  { %6925 = vmatpush3.bf16.msra.mxu1 %v7479_v10  ;;  %6904 = vmatprep.subr.bf16.mxu0 %v7480_v11  ;;  %v7534_v10 = vld [vmem:[%s9651_s1 + $0xc00] sm:$0xff]  }
 0x16a   :  { %6926 = vmatprep.subr.bf16.mxu1 %v7481_v12  ;;  %v7535_v11 = vld [vmem:[%s9651_s1 + $0xc80] sm:$0xff]  }
 0x16b   :  { %v39_v12 = vld [vmem:[%s9652_s0 + $0xc0] sm:$0xff] }
 0x16c   :  { %6905 = vmatpush3.bf16.msra.mxu0 %v7482_v13  ;;  %v71_v13 = vld [vmem:[%s9652_s0 + $0x1c0] sm:$0xff] }
 0x16d   :  { %6927 = vmatpush3.bf16.msra.mxu1 %v7483_v14  ;;  %6906 = vmatprep.subr.bf16.mxu0 %v7484_v15  ;;  %v5879_v14 = vcombine.low %v39_v12, %v71_v13  ;;  %v5880_v15 = vcombine.high %v39_v12, %v71_v13  ;;  %v7583_v12 = vld [vmem:[%s9651_s1 + $0xea0] sm:$0xff]   ;;  %v7584_v13 = vld [vmem:[%s9651_s1 + $0xe58] sm:$0xff]  }
 0x16e   :  { %6928 = vmatprep.subr.bf16.mxu1 %v7485_v16  ;;  %v40_v16 = vld [vmem:[%s9652_s0 + $0xc8] sm:$0xff] }
 0x170   :  { %6907 = vmatpush3.bf16.msra.mxu0 %v7486_v17  ;;  %v72_v17 = vld [vmem:[%s9652_s0 + $0x1c8] sm:$0xff] }
 0x171   :  { %6929 = vmatpush3.bf16.msra.mxu1 %v7487_v18  ;;  %6908 = vmatprep.subr.bf16.mxu0 %v7488_v19  ;;  %v5881_v18 = vcombine.low %v40_v16, %v72_v17  ;;  %v5882_v19 = vcombine.high %v40_v16, %v72_v17  ;;  %v7587_v16 = vld [vmem:[%s9651_s1 + $0xe98] sm:$0xff]   ;;  %v7588_v17 = vld [vmem:[%s9651_s1 + $0xe50] sm:$0xff]  }
 0x172   :  { %6930 = vmatprep.subr.bf16.mxu1 %v7489_v20  ;;  %v7536_v20 = vld [vmem:[%s9651_s1 + $0xd78] sm:$0xff]  }
 0x174   :  { %6909 = vmatpush3.bf16.msra.mxu0 %v7490_v21  ;;  %v7537_v21 = vld [vmem:[%s9651_s1 + $0xdf8] sm:$0xff]  }
 0x175   :  { %6931 = vmatpush3.bf16.msra.mxu1 %v7491_v22  ;;  %6910 = vmatprep.subr.bf16.mxu0 %v7492_v23  ;;  %v7538_v22 = vld [vmem:[%s9651_s1 + $0xd38] sm:$0xff]  }
 0x176   :  { %6932 = vmatprep.subr.bf16.mxu1 %v7493_v24  ;;  %v7539_v23 = vld [vmem:[%s9651_s1 + $0xdb8] sm:$0xff]   ;;  %v7540_v24 = vld [vmem:[%s9651_s1 + $0xd70] sm:$0xff]  }
 0x178   :  { %6911 = vmatpush3.bf16.msra.mxu0 %v7494_v25  ;;  %v7541_v25 = vld [vmem:[%s9651_s1 + $0xdf0] sm:$0xff]  }
 0x179   :  { %6933 = vmatpush3.bf16.msra.mxu1 %v7495_v26  ;;  %6912 = vmatprep.subr.bf16.mxu0 %v7496_v27  ;;  %v7542_v26 = vld [vmem:[%s9651_s1 + $0xd30] sm:$0xff]  }
 0x17a   :  { %6934 = vmatprep.subr.bf16.mxu1 %v7497_v28  ;;  %v7543_v27 = vld [vmem:[%s9651_s1 + $0xdb0] sm:$0xff]   ;;  %v7544_v28 = vld [vmem:[%s9651_s1 + $0xd68] sm:$0xff]  }
 0x17c   :  { %6913 = vmatpush3.bf16.msra.mxu0 %v7498_v29  ;;  %v7545_v29 = vld [vmem:[%s9651_s1 + $0xde8] sm:$0xff]  }
 0x17d   :  { %6935 = vmatpush3.bf16.msra.mxu1 %v7499_v30  ;;  %6914 = vmatprep.subr.bf16.mxu0 %v7500_v31  ;;  %v7546_v30 = vld [vmem:[%s9651_s1 + $0xd28] sm:$0xff]  }
 0x17e   :  { %6936 = vmatprep.subr.bf16.mxu1 %v7501_v32  ;;  %v7547_v31 = vld [vmem:[%s9651_s1 + $0xda8] sm:$0xff]   ;;  %v7548_v32 = vld [vmem:[%s9651_s1 + $0xd60] sm:$0xff]  }
 0x180   :  { %6915 = vmatpush3.bf16.msra.mxu0 %v7502_v33  ;;  %v7549_v33 = vld [vmem:[%s9651_s1 + $0xde0] sm:$0xff]  }
 0x181   :  { %6937 = vmatpush3.bf16.msra.mxu1 %v7503_v34  ;;  %6944 = vmatprep.subr.bf16.mxu0 %v7504_v44  ;;  %v7550_v34 = vld [vmem:[%s9651_s1 + $0xd20] sm:$0xff]   ;;  %v7559_v44 = vld [vmem:[%s9651_s1 + $0xd90] sm:$0xff]  }
 0x182   :  { %6966 = vmatprep.subr.bf16.mxu1 %v7505_v45  ;;  %v7560_v45 = vld [vmem:[%s9651_s1 + $0xd48] sm:$0xff]  }
 0x183   :  { %5437 = vmatmul.mubr.bf16.vlgmr.msra.gmra.mxu0 %v5875_v39  ;;  %v7554_v39 = vld [vmem:[%s9651_s1 + $0xd18] sm:$0xff]  }
 0x184   :  { %5478 = vmatmul.mubr.bf16.vlgmr.msra.gmra.mxu1 %v5877_v42  ;;  %6945 = vmatpush3.bf16.msra.mxu0 %v7506_v46  ;;  %v7557_v42 = vld [vmem:[%s9651_s1 + $0xdd0] sm:$0xff]   ;;  %v7561_v46 = vld [vmem:[%s9651_s1 + $0xdc8] sm:$0xff]  }
 0x185   :  { %6967 = vmatpush3.bf16.msra.mxu1 %v7507_v47  ;;  %6946 = vmatprep.subr.bf16.mxu0 %v7508_v48  ;;  %v7562_v47 = vld [vmem:[%s9651_s1 + $0xd08] sm:$0xff]  }
 0x186   :  { %6968 = vmatprep.subr.bf16.mxu1 %v7509_v49  ;;  %5518 = vmatprep.mubr.bf16.mxu0 %v5880_v15  ;;  %v7563_v48 = vld [vmem:[%s9651_s1 + $0xd88] sm:$0xff]   ;;  %v7564_v49 = vld [vmem:[%s9651_s1 + $0xd40] sm:$0xff]   ;;  %v7586_v15 = vld [vmem:[%s9651_s1 + $0xe18] sm:$0xff]  }
 0x187   :  { %5559 = vmatprep.mubr.bf16.mxu1 %v5882_v19  ;;  %v7590_v19 = vld [vmem:[%s9651_s1 + $0xe10] sm:$0xff]  }
 0x188   :  { %6947 = vmatpush3.bf16.msra.mxu0 %v7510_v50  ;;  %v7565_v50 = vld [vmem:[%s9651_s1 + $0xdc0] sm:$0xff]  }
 0x189   :  { %6969 = vmatpush3.bf16.msra.mxu1 %v7511_v51  ;;  %6948 = vmatprep.subr.bf16.mxu0 %v7512_v52  ;;  %v7566_v51 = vld [vmem:[%s9651_s1 + $0xd00] sm:$0xff]  }
 0x18a   :  { %6970 = vmatprep.subr.bf16.mxu1 %v7513_v53  ;;  %v7567_v52 = vld [vmem:[%s9651_s1 + $0xd80] sm:$0xff]   ;;  %v41_v53 = vld [vmem:[%s9652_s0 + $0xd0] sm:$0xff] }
 0x18c   :  { %6949 = vmatpush3.bf16.msra.mxu0 %v7514_v54  ;;  %v73_v54 = vld [vmem:[%s9652_s0 + $0x1d0] sm:$0xff] }
 0x18d   :  { %6971 = vmatpush3.bf16.msra.mxu1 %v7515_v55  ;;  %6950 = vmatprep.subr.bf16.mxu0 %v7516_v56  ;;  %v42_v55 = vld [vmem:[%s9652_s0 + $0xd8] sm:$0xff] }
 0x18e   :  { %6972 = vmatprep.subr.bf16.mxu1 %v7517_v57  ;;  %v74_v56 = vld [vmem:[%s9652_s0 + $0x1d8] sm:$0xff]  ;;  %v5883_v57 = vcombine.low %v41_v53, %v73_v54 }
 0x190   :  { %6951 = vmatpush3.bf16.msra.mxu0 %v7518_v58  ;;  %v5884_v58 = vcombine.high %v41_v53, %v73_v54  ;;  %v7615_v53 = vld [vmem:[%s9651_s1 + $0xfa0] sm:$0xff]   ;;  %v7616_v54 = vld [vmem:[%s9651_s1 + $0xf58] sm:$0xff]  }
 0x191   :  { %6973 = vmatpush3.bf16.msra.mxu1 %v7519_v59  ;;  %6952 = vmatprep.subr.bf16.mxu0 %v7520_v60  ;;  %v5885_v59 = vcombine.low %v42_v55, %v74_v56  ;;  %v5886_v60 = vcombine.high %v42_v55, %v74_v56  ;;  %v7617_v55 = vld [vmem:[%s9651_s1 + $0xfd8] sm:$0xff]  }
 0x192   :  { %6974 = vmatprep.subr.bf16.mxu1 %v7521_v61  ;;  %v7568_v61 = vld [vmem:[%s9651_s1 + $0xe78] sm:$0xff]  }
 0x193   :  { %v7618_v56 = vld [vmem:[%s9651_s1 + $0xf18] sm:$0xff]  }
 0x194   :  { %6953 = vmatpush3.bf16.msra.mxu0 %v7522_v62  ;;  %v7569_v62 = vld [vmem:[%s9651_s1 + $0xef8] sm:$0xff]  }
 0x195   :  { %6975 = vmatpush3.bf16.msra.mxu1 %v7523_v63  ;;  %6954 = vmatprep.subr.bf16.mxu0 %v7524_v0  ;;  %v7570_v63 = vld [vmem:[%s9651_s1 + $0xe38] sm:$0xff]  }
 0x196   :  { %6976 = vmatprep.subr.bf16.mxu1 %v7525_v1  ;;  %v7571_v0 = vld [vmem:[%s9651_s1 + $0xeb8] sm:$0xff]   ;;  %v7572_v1 = vld [vmem:[%s9651_s1 + $0xe70] sm:$0xff]  }
 0x198   :  { %6955 = vmatpush3.bf16.msra.mxu0 %v7526_v2  ;;  %v7573_v2 = vld [vmem:[%s9651_s1 + $0xef0] sm:$0xff]  }
 0x199   :  { %6977 = vmatpush3.bf16.msra.mxu1 %v7527_v3  ;;  %6956 = vmatprep.subr.bf16.mxu0 %v7528_v4  ;;  %v7574_v3 = vld [vmem:[%s9651_s1 + $0xe30] sm:$0xff]  }
 0x19a   :  { %6978 = vmatprep.subr.bf16.mxu1 %v7529_v5  ;;  %v7575_v4 = vld [vmem:[%s9651_s1 + $0xeb0] sm:$0xff]   ;;  %v7576_v5 = vld [vmem:[%s9651_s1 + $0xe68] sm:$0xff]  }
 0x19c   :  { %6957 = vmatpush3.bf16.msra.mxu0 %v7530_v6  ;;  %v7577_v6 = vld [vmem:[%s9651_s1 + $0xee8] sm:$0xff]  }
 0x19d   :  { %6979 = vmatpush3.bf16.msra.mxu1 %v7531_v7  ;;  %6958 = vmatprep.subr.bf16.mxu0 %v7532_v8  ;;  %v7578_v7 = vld [vmem:[%s9651_s1 + $0xe28] sm:$0xff]  }
 0x19e   :  { %6980 = vmatprep.subr.bf16.mxu1 %v7533_v9  ;;  %v7579_v8 = vld [vmem:[%s9651_s1 + $0xea8] sm:$0xff]   ;;  %v7580_v9 = vld [vmem:[%s9651_s1 + $0xe60] sm:$0xff]  }
 0x1a0   :  { %6959 = vmatpush3.bf16.msra.mxu0 %v7534_v10  ;;  %v7581_v10 = vld [vmem:[%s9651_s1 + $0xee0] sm:$0xff]  }
 0x1a1   :  { %6981 = vmatpush3.bf16.msra.mxu1 %v7535_v11  ;;  %6988 = vmatprep.subr.bf16.mxu0 %v7536_v20  ;;  %v7582_v11 = vld [vmem:[%s9651_s1 + $0xe20] sm:$0xff]   ;;  %v7591_v20 = vld [vmem:[%s9651_s1 + $0xe90] sm:$0xff]  }
 0x1a2   :  { %7010 = vmatprep.subr.bf16.mxu1 %v7537_v21  ;;  %v7592_v21 = vld [vmem:[%s9651_s1 + $0xe48] sm:$0xff]  }
 0x1a3   :  { %5519 = vmatmul.mubr.bf16.vlgmr.msra.gmra.mxu0 %v5879_v14  ;;  %v7585_v14 = vld [vmem:[%s9651_s1 + $0xed8] sm:$0xff]  }
 0x1a4   :  { %5560 = vmatmul.mubr.bf16.vlgmr.msra.gmra.mxu1 %v5881_v18  ;;  %6989 = vmatpush3.bf16.msra.mxu0 %v7538_v22  ;;  %v7589_v18 = vld [vmem:[%s9651_s1 + $0xed0] sm:$0xff]   ;;  %v7593_v22 = vld [vmem:[%s9651_s1 + $0xec8] sm:$0xff]  }
 0x1a5   :  { %7011 = vmatpush3.bf16.msra.mxu1 %v7539_v23  ;;  %6990 = vmatprep.subr.bf16.mxu0 %v7540_v24  ;;  %v7594_v23 = vld [vmem:[%s9651_s1 + $0xe08] sm:$0xff]  }
 0x1a6   :  { %7012 = vmatprep.subr.bf16.mxu1 %v7541_v25  ;;  %5600 = vmatprep.mubr.bf16.mxu0 %v5884_v58  ;;  %v7595_v24 = vld [vmem:[%s9651_s1 + $0xe88] sm:$0xff]   ;;  %v7596_v25 = vld [vmem:[%s9651_s1 + $0xe40] sm:$0xff]   ;;  %v7620_v58 = vld [vmem:[%s9651_s1 + $0xf50] sm:$0xff]  }
 0x1a7   :  { %5641 = vmatprep.mubr.bf16.mxu1 %v5886_v60  ;;  %v7622_v60 = vld [vmem:[%s9651_s1 + $0xf10] sm:$0xff]  }
 0x1a8   :  { %6991 = vmatpush3.bf16.msra.mxu0 %v7542_v26  ;;  %v7597_v26 = vld [vmem:[%s9651_s1 + $0xec0] sm:$0xff]  }
 0x1a9   :  { %7013 = vmatpush3.bf16.msra.mxu1 %v7543_v27  ;;  %6992 = vmatprep.subr.bf16.mxu0 %v7544_v28  ;;  %v7598_v27 = vld [vmem:[%s9651_s1 + $0xe00] sm:$0xff]  }
 0x1aa   :  { %7014 = vmatprep.subr.bf16.mxu1 %v7545_v29  ;;  %v7599_v28 = vld [vmem:[%s9651_s1 + $0xe80] sm:$0xff]  }
 0x1ab   :  { %v43_v29 = vld [vmem:[%s9652_s0 + $0xe0] sm:$0xff] }
 0x1ac   :  { %6993 = vmatpush3.bf16.msra.mxu0 %v7546_v30  ;;  %v75_v30 = vld [vmem:[%s9652_s0 + $0x1e0] sm:$0xff] }
 0x1ad   :  { %7015 = vmatpush3.bf16.msra.mxu1 %v7547_v31  ;;  %6994 = vmatprep.subr.bf16.mxu0 %v7548_v32  ;;  %v44_v31 = vld [vmem:[%s9652_s0 + $0xe8] sm:$0xff]  ;;  %v5887_v32 = vcombine.low %v43_v29, %v75_v30 }
 0x1ae   :  { %7016 = vmatprep.subr.bf16.mxu1 %v7549_v33  ;;  %v5888_v33 = vcombine.high %v43_v29, %v75_v30 }
 0x1b0   :  { %6995 = vmatpush3.bf16.msra.mxu0 %v7550_v34  ;;  %v76_v34 = vld [vmem:[%s9652_s0 + $0x1e8] sm:$0xff] }
 0x1b1   :  { %7017 = vmatpush3.bf16.msra.mxu1 %v7551_v35  ;;  %6996 = vmatprep.subr.bf16.mxu0 %v7552_v36  ;;  %v5889_v35 = vcombine.low %v44_v31, %v76_v34  ;;  %v5890_v36 = vcombine.high %v44_v31, %v76_v34 }
 0x1b2   :  { %7018 = vmatprep.subr.bf16.mxu1 %v7553_v37  ;;  %v7600_v37 = vld [vmem:[%s9651_s1 + $0xf78] sm:$0xff]  }
 0x1b4   :  { %6997 = vmatpush3.bf16.msra.mxu0 %v7554_v39  ;;  %v7601_v39 = vld [vmem:[%s9651_s1 + $0xff8] sm:$0xff]  }
 0x1b5   :  { %7019 = vmatpush3.bf16.msra.mxu1 %v7555_v40  ;;  %6998 = vmatprep.subr.bf16.mxu0 %v7556_v41  ;;  %v7602_v40 = vld [vmem:[%s9651_s1 + $0xf38] sm:$0xff]  }
 0x1b6   :  { %7020 = vmatprep.subr.bf16.mxu1 %v7557_v42  ;;  %v7603_v41 = vld [vmem:[%s9651_s1 + $0xfb8] sm:$0xff]   ;;  %v7604_v42 = vld [vmem:[%s9651_s1 + $0xf70] sm:$0xff]  }
 0x1b8   :  { %6999 = vmatpush3.bf16.msra.mxu0 %v7558_v43  ;;  %v7605_v43 = vld [vmem:[%s9651_s1 + $0xff0] sm:$0xff]  }
 0x1b9   :  { %7021 = vmatpush3.bf16.msra.mxu1 %v7559_v44  ;;  %7000 = vmatprep.subr.bf16.mxu0 %v7560_v45  ;;  %v7606_v44 = vld [vmem:[%s9651_s1 + $0xf30] sm:$0xff]  }
 0x1ba   :  { %7022 = vmatprep.subr.bf16.mxu1 %v7561_v46  ;;  %v7607_v45 = vld [vmem:[%s9651_s1 + $0xfb0] sm:$0xff]   ;;  %v7608_v46 = vld [vmem:[%s9651_s1 + $0xf68] sm:$0xff]  }
 0x1bc   :  { %7001 = vmatpush3.bf16.msra.mxu0 %v7562_v47  ;;  %v7609_v47 = vld [vmem:[%s9651_s1 + $0xfe8] sm:$0xff]  }
 0x1bd   :  { %7023 = vmatpush3.bf16.msra.mxu1 %v7563_v48  ;;  %7002 = vmatprep.subr.bf16.mxu0 %v7564_v49  ;;  %v7610_v48 = vld [vmem:[%s9651_s1 + $0xf28] sm:$0xff]  }
 0x1be   :  { %7024 = vmatprep.subr.bf16.mxu1 %v7565_v50  ;;  %v7611_v49 = vld [vmem:[%s9651_s1 + $0xfa8] sm:$0xff]   ;;  %v7612_v50 = vld [vmem:[%s9651_s1 + $0xf60] sm:$0xff]  }
 0x1c0   :  { %7003 = vmatpush3.bf16.msra.mxu0 %v7566_v51  ;;  %v7613_v51 = vld [vmem:[%s9651_s1 + $0xfe0] sm:$0xff]  }
 0x1c1   :  { %7025 = vmatpush3.bf16.msra.mxu1 %v7567_v52  ;;  %7032 = vmatprep.subr.bf16.mxu0 %v7568_v61  ;;  %v7614_v52 = vld [vmem:[%s9651_s1 + $0xf20] sm:$0xff]   ;;  %v9347_v61 = vpop.f32.mrf.mxu0 }
 0x1c2   :  { %7054 = vmatprep.subr.bf16.mxu1 %v7569_v62  ;;  %v7623_v62 = vld [vmem:[%s9651_s1 + $0xf90] sm:$0xff]  }
 0x1c3   :  { %5601 = vmatmul.mubr.bf16.vlgmr.msra.gmra.mxu0 %v5883_v57  ;;  %v7619_v57 = vld [vmem:[%s9651_s1 + $0xf98] sm:$0xff]  }
 0x1c4   :  { %5642 = vmatmul.mubr.bf16.vlgmr.msra.gmra.mxu1 %v5885_v59  ;;  %7033 = vmatpush3.bf16.msra.mxu0 %v7570_v63  ;;  %v7621_v59 = vld [vmem:[%s9651_s1 + $0xfd0] sm:$0xff]   ;;  %v7624_v63 = vld [vmem:[%s9651_s1 + $0xf48] sm:$0xff]  }
 0x1c5   :  { %7055 = vmatpush3.bf16.msra.mxu1 %v7571_v0  ;;  %7034 = vmatprep.subr.bf16.mxu0 %v7572_v1  ;;  %v7625_v0 = vld [vmem:[%s9651_s1 + $0xfc8] sm:$0xff]   ;;  %v9358_v1 = vpop.f32.mrf.mxu1 }
 0x1c6   :  { %7056 = vmatprep.subr.bf16.mxu1 %v7573_v2  ;;  %5682 = vmatprep.mubr.bf16.mxu0 %v5888_v33  ;;  %v7626_v2 = vld [vmem:[%s9651_s1 + $0xf08] sm:$0xff]  }
 0x1c7   :  { %5723 = vmatprep.mubr.bf16.mxu1 %v5890_v36 }
 0x1c8   :  { %7035 = vmatpush3.bf16.msra.mxu0 %v7574_v3  ;;  %v9363_v3 = vpop.f32.mrf.mxu0 }
 0x1c9   :  { %7057 = vmatpush3.bf16.msra.mxu1 %v7575_v4  ;;  %7036 = vmatprep.subr.bf16.mxu0 %v7576_v5  ;;  %v7627_v4 = vld [vmem:[%s9651_s1 + $0xf88] sm:$0xff]   ;;  %v7628_v5 = vld [vmem:[%s9651_s1 + $0xf40] sm:$0xff]  }
 0x1ca   :  { %7058 = vmatprep.subr.bf16.mxu1 %v7577_v6  ;;  %v9371_v6 = vpop.f32.mrf.mxu0 }
 0x1cc   :  { %7037 = vmatpush3.bf16.msra.mxu0 %v7578_v7  ;;  %v7629_v7 = vld [vmem:[%s9651_s1 + $0xfc0] sm:$0xff]  }
 0x1cd   :  { %7059 = vmatpush3.bf16.msra.mxu1 %v7579_v8  ;;  %7038 = vmatprep.subr.bf16.mxu0 %v7580_v9  ;;  %v9376_v8 = vpop.f32.mrf.mxu1  ;;  %v7630_v9 = vld [vmem:[%s9651_s1 + $0xf00] sm:$0xff]  }
 0x1ce   :  { %7060 = vmatprep.subr.bf16.mxu1 %v7581_v10  ;;  %v7631_v10 = vld [vmem:[%s9651_s1 + $0xf80] sm:$0xff]  }
 0x1d0   :  { %7039 = vmatpush3.bf16.msra.mxu0 %v7582_v11  ;;  %v45_v11 = vld [vmem:[%s9652_s0 + $0xf0] sm:$0xff] }
 0x1d1   :  { %7061 = vmatpush3.bf16.msra.mxu1 %v7583_v12  ;;  %7040 = vmatprep.subr.bf16.mxu0 %v7584_v13  ;;  %v77_v12 = vld [vmem:[%s9652_s0 + $0x1f0] sm:$0xff]  ;;  %v9390_v13 = vpop.f32.mrf.mxu1 }
 0x1d2   :  { %7062 = vmatprep.subr.bf16.mxu1 %v7585_v14  ;;  %v5891_v14 = vcombine.low %v45_v11, %v77_v12 }
 0x1d4   :  { %7041 = vmatpush3.bf16.msra.mxu0 %v7586_v15  ;;  %v5892_v15 = vcombine.high %v45_v11, %v77_v12 }
 0x1d5   :  { %7063 = vmatpush3.bf16.msra.mxu1 %v7587_v16  ;;  %7042 = vmatprep.subr.bf16.mxu0 %v7588_v17  ;;  %v46_v16 = vld [vmem:[%s9652_s0 + $0xf8] sm:$0xff] }
 0x1d6   :  { %7064 = vmatprep.subr.bf16.mxu1 %v7589_v18  ;;  %v78_v17 = vld [vmem:[%s9652_s0 + $0x1f8] sm:$0xff]  ;;  %v9398_v18 = vpop.f32.mrf.mxu0 }
 0x1d8   :  { %7043 = vmatpush3.bf16.msra.mxu0 %v7590_v19  ;;  %v5893_v19 = vcombine.low %v46_v16, %v78_v17 }
 0x1d9   :  { %7065 = vmatpush3.bf16.msra.mxu1 %v7591_v20  ;;  %7044 = vmatprep.subr.bf16.mxu0 %v7592_v21  ;;  %v5894_v20 = vcombine.high %v46_v16, %v78_v17  ;;  %v9400_v21 = vpop.f32.mrf.mxu1 }
 0x1da   :  { %7066 = vmatprep.subr.bf16.mxu1 %v7593_v22  ;;  %v9402_v22 = vpop.f32.mrf.mxu0 }
 0x1dc   :  { %7045 = vmatpush3.bf16.msra.mxu0 %v7594_v23  ;;  %v9404_v23 = vpop.f32.mrf.mxu1 }
 0x1dd   :  { %7067 = vmatpush3.bf16.msra.mxu1 %v7595_v24  ;;  %7046 = vmatprep.subr.bf16.mxu0 %v7596_v25  ;;  %v9406_v24 = vpop.f32.mrf.mxu0 }
 0x1de   :  { %7068 = vmatprep.subr.bf16.mxu1 %v7597_v26  ;;  %v9410_v26 = vpop.f32.mrf.mxu1 }
 0x1df   :  { %v9408_v25 = vpop.f32.mrf.mxu0 }
 0x1e0   :  { %7047 = vmatpush3.bf16.msra.mxu0 %v7598_v27  ;;  %v9412_v27 = vpop.f32.mrf.mxu1 }
 0x1e1   :  { %7069 = vmatpush3.bf16.msra.mxu1 %v7599_v28  ;;  %7076 = vmatprep.subr.bf16.mxu0 %v7600_v37  ;;  %v9414_v28 = vpop.f32.mrf.mxu0 }
 0x1e2   :  { %7098 = vmatprep.subr.bf16.mxu1 %v7601_v39  ;;  %v9416_v29 = vpop.f32.mrf.mxu1 }
 0x1e3   :  { %5683 = vmatmul.mubr.bf16.vlgmr.msra.gmra.mxu0 %v5887_v32  ;;  %v9418_v30 = vpop.f32.mrf.mxu0 }
 0x1e4   :  { %5724 = vmatmul.mubr.bf16.vlgmr.msra.gmra.mxu1 %v5889_v35  ;;  %7077 = vmatpush3.bf16.msra.mxu0 %v7602_v40  ;;  %v9420_v31 = vpop.f32.mrf.mxu1 }
 0x1e5   :  { %7099 = vmatpush3.bf16.msra.mxu1 %v7603_v41  ;;  %7078 = vmatprep.subr.bf16.mxu0 %v7604_v42  ;;  %v9422_v32 = vpop.f32.mrf.mxu0 }
 0x1e6   :  { %7100 = vmatprep.subr.bf16.mxu1 %v7605_v43  ;;  %5764 = vmatprep.mubr.bf16.mxu0 %v5892_v15  ;;  %v9426_v34 = vpop.f32.mrf.mxu1 }
 0x1e7   :  { %5805 = vmatprep.mubr.bf16.mxu1 %v5894_v20  ;;  %v9424_v33 = vpop.f32.mrf.mxu0 }
 0x1e8   :  { %7079 = vmatpush3.bf16.msra.mxu0 %v7606_v44  ;;  %v9428_v35 = vpop.f32.mrf.mxu1 }
 0x1e9   :  { %7101 = vmatpush3.bf16.msra.mxu1 %v7607_v45  ;;  %7080 = vmatprep.subr.bf16.mxu0 %v7608_v46  ;;  %v9430_v36 = vpop.f32.mrf.mxu0 }
 0x1ea   :  { %7102 = vmatprep.subr.bf16.mxu1 %v7609_v47  ;;  %v9432_v37 = vpop.f32.mrf.mxu1 }
 0x1eb   :  { %v9434_v39 = vpop.f32.mrf.mxu0 }
 0x1ec   :  { %7081 = vmatpush3.bf16.msra.mxu0 %v7610_v48  ;;  %v9436_v40 = vpop.f32.mrf.mxu1 }
 0x1ed   :  { %7103 = vmatpush3.bf16.msra.mxu1 %v7611_v49  ;;  %7082 = vmatprep.subr.bf16.mxu0 %v7612_v50  ;;  %v9438_v41 = vpop.f32.mrf.mxu0 }
 0x1ee   :  { %7104 = vmatprep.subr.bf16.mxu1 %v7613_v51  ;;  %v9442_v43 = vpop.f32.mrf.mxu1 }
 0x1ef   :  { %v9440_v42 = vpop.f32.mrf.mxu0 }
 0x1f0   :  { %7083 = vmatpush3.bf16.msra.mxu0 %v7614_v52  ;;  %v9444_v44 = vpop.f32.mrf.mxu1 }
 0x1f1   :  { %7105 = vmatpush3.bf16.msra.mxu1 %v7615_v53  ;;  %7084 = vmatprep.subr.bf16.mxu0 %v7616_v54  ;;  %v9446_v45 = vpop.f32.mrf.mxu0 }
 0x1f2   :  { %7106 = vmatprep.subr.bf16.mxu1 %v7617_v55  ;;  %v9448_v46 = vpop.f32.mrf.mxu1 }
 0x1f3   :  { %v9450_v47 = vpop.f32.mrf.mxu0 }
 0x1f4   :  { %7085 = vmatpush3.bf16.msra.mxu0 %v7618_v56  ;;  %v9452_v48 = vpop.f32.mrf.mxu1 }
 0x1f5   :  { %7107 = vmatpush3.bf16.msra.mxu1 %v7619_v57  ;;  %7086 = vmatprep.subr.bf16.mxu0 %v7620_v58  ;;  %v9454_v49 = vpop.f32.mrf.mxu0 }
 0x1f6   :  { %7108 = vmatprep.subr.bf16.mxu1 %v7621_v59  ;;  %v9458_v51 = vpop.f32.mrf.mxu1 }
 0x1f7   :  { %v9456_v50 = vpop.f32.mrf.mxu0 }
 0x1f8   :  { %7087 = vmatpush3.bf16.msra.mxu0 %v7622_v60  ;;  %v9460_v52 = vpop.f32.mrf.mxu1 }
 0x1f9   :  { %7109 = vmatpush3.bf16.msra.mxu1 %v7623_v62  ;;  %7088 = vmatprep.subr.bf16.mxu0 %v7624_v63  ;;  %v9462_v53 = vpop.f32.mrf.mxu0 }
 0x1fa   :  { %7110 = vmatprep.subr.bf16.mxu1 %v7625_v0  ;;  %v9464_v54 = vpop.f32.mrf.mxu1 }
 0x1fb   :  { %v9466_v55 = vpop.f32.mrf.mxu0 }
 0x1fc   :  { %7089 = vmatpush3.bf16.msra.mxu0 %v7626_v2  ;;  %v9468_v56 = vpop.f32.mrf.mxu1 }
 0x1fd   :  { %7111 = vmatpush3.bf16.msra.mxu1 %v7627_v4  ;;  %7090 = vmatprep.subr.bf16.mxu0 %v7628_v5  ;;  %v9470_v57 = vpop.f32.mrf.mxu0 }
 0x1fe   :  { %7112 = vmatprep.subr.bf16.mxu1 %v7629_v7  ;;  %v9474_v59 = vpop.f32.mrf.mxu1 }
 0x1ff   :  { %v9472_v58 = vpop.f32.mrf.mxu0 }
 0x200   :  { %7091 = vmatpush3.bf16.msra.mxu0 %v7630_v9  ;;  %v9476_v60 = vpop.f32.mrf.mxu1 }
 0x201   :  { %7113 = vmatpush3.bf16.msra.mxu1 %v7631_v10  ;;  %v9478_v62 = vpop.f32.mrf.mxu0 }
 0x202   :  { %v9480_v63 = vpop.f32.mrf.mxu1 }
 0x203   :  { %5765 = vmatmul.mubr.bf16.vlgmr.msra.gmra.mxu0 %v5891_v14  ;;  %v9482_v0 = vpop.f32.mrf.mxu0 }
 0x204   :  { %5806 = vmatmul.mubr.bf16.vlgmr.msra.gmra.mxu1 %v5893_v19  ;;  %v9484_v2 = vpop.f32.mrf.mxu1 }
 0x205   :  { %9655 = vst [vmem:[#allocation2_spill] sm:$0xff] %v9484_v2  ;;  %v9486_v4 = vpop.f32.mrf.mxu0 }
 0x206   :  { %v9490_v7 = vpop.f32.mrf.mxu1 }
 0x207   :  { %v9488_v5 = vpop.f32.mrf.mxu0  ;;  %9656 = vst [vmem:[#allocation3_spill] sm:$0xff] %v9490_v7 }
 0x208   :  { %v9492_v9 = vpop.f32.mrf.mxu1 }
 0x209   :  { %9657 = vst [vmem:[#allocation4_spill] sm:$0xff] %v9492_v9  ;;  %v9494_v10 = vpop.f32.mrf.mxu0 }
 0x20a   :  { %v9496_v11 = vpop.f32.mrf.mxu1 }
 0x20b   :  { %9658 = vst [vmem:[#allocation5_spill] sm:$0xff] %v9496_v11  ;;  %v9498_v12 = vpop.f32.mrf.mxu0 }
 0x20c   :  { %9659 = vst [vmem:[#allocation6_spill] sm:$0xff] %v9498_v12  ;;  %v9500_v14 = vpop.f32.mrf.mxu1 }
 0x20d   :  { %9660 = vst [vmem:[#allocation7_spill] sm:$0xff] %v9500_v14  ;;  %v9502_v15 = vpop.f32.mrf.mxu0  ;;  %v6437_v14 = vadd.f32 %v9363_v3, %v9347_v61  ;;  %v6500_v61 = vadd.f32 %v9400_v21, %v9390_v13  ;;  %v6481_v3 = vadd.f32 %v9406_v24, %v9402_v22  ;;  %v6544_v13 = vadd.f32 %v9416_v29, %v9412_v27 }
 0x20e   :  { %v9506_v17 = vpop.f32.mrf.mxu1  ;;  %v6525_v21 = vadd.f32 %v9422_v32, %v9418_v30  ;;  %v6588_v29 = vadd.f32 %v9432_v37, %v9428_v35  ;;  %v6569_v30 = vadd.f32 %v9438_v41, %v9434_v39  ;;  %v6632_v35 = vadd.f32 %v9448_v46, %v9444_v44 }
 0x20f   :  { %v9504_v16 = vpop.f32.mrf.mxu0  ;;  %9662 = vst [vmem:[#allocation9_spill] sm:$0xff] %v9506_v17  ;;  %v6613_v37 = vadd.f32 %v9454_v49, %v9450_v47  ;;  %v6676_v46 = vadd.f32 %v9464_v54, %v9460_v52  ;;  %v6657_v47 = vadd.f32 %v9470_v57, %v9466_v55  ;;  %v6720_v52 = vadd.f32 %v9480_v63, %v9476_v60 }
 0x210   :  { %9661 = vst [vmem:[#allocation8_spill] sm:$0xff] %v9504_v16  ;;  %v9508_v19 = vpop.f32.mrf.mxu1  ;;  %v6701_v54 = vadd.f32 %v9486_v4, %v9482_v0  ;;  %v6742_v57 = vadd.f32 %v9494_v10, %v9488_v5 }
 0x211   :  { %9663 = vst [vmem:[#allocation10_spill] sm:$0xff] %v9508_v19  ;;  %v9510_v20 = vpop.f32.mrf.mxu0  ;;  %v6478_v19 = vadd.f32 %v9398_v18, %v9371_v6 }
 0x212   :  { %9664 = vst [vmem:[#allocation11_spill] sm:$0xff] %v9510_v20  ;;  %v9512_v7 = vpop.f32.mrf.mxu1 }
 0x213   :  { %v9514_v9 = vpop.f32.mrf.mxu0  ;;  %v9676_v60 = vld [vmem:[#allocation6_spill] sm:$0xff] }
 0x214   :  { %9665 = vst [vmem:[#allocation12_spill] sm:$0xff] %v9514_v9  ;;  %v9516_v2 = vpop.f32.mrf.mxu1  ;;  %v6745_v63 = vadd.f32 %v9502_v15, %v9676_v60 }
 0x215   :  { %9666 = vst [vmem:[#allocation13_spill] sm:$0xff] %v9516_v2  ;;  %v9518_v11 = vpop.f32.mrf.mxu0  ;;  %v7632_v2 = vld [vmem:[%s9653_s2] ss:$0 sm:$0xff] }
 0x216   :  { %9667 = vst [vmem:[#allocation14_spill] sm:$0xff] %v9518_v11  ;;  %v9524_v16 = vpop.f32.mrf.mxu1  ;;  %v4540_v9 = vadd.f32 %v7632_v2, %v6437_v14  ;;  %v4619_v11 = vadd.f32 %v6478_v19, %v8430_v38  ;;  %v6503_v38 = vadd.f32 %v9410_v26, %v9404_v23  ;;  %v6547_v26 = vadd.f32 %v9426_v34, %v9420_v31 }
 0x217   :  { %v9520_v12 = vpop.f32.mrf.mxu0  ;;  %9669 = vst [vmem:[#allocation16_spill] sm:$0xff] %v9524_v16  ;;  %v6522_v16 = vadd.f32 %v9414_v28, %v9408_v25  ;;  %v6566_v25 = vadd.f32 %v9430_v36, %v9424_v33  ;;  %v6610_v33 = vadd.f32 %v9446_v45, %v9440_v42  ;;  %v6591_v31 = vadd.f32 %v9442_v43, %v9436_v40 }
 0x218   :  { %9668 = vst [vmem:[#allocation15_spill] sm:$0xff] %v9520_v12  ;;  %v9528_v17 = vpop.f32.mrf.mxu1  ;;  %v6459_v12 = vadd.f32 %v9376_v8, %v9358_v1  ;;  %v4660_v2 = vadd.f32 %v6500_v61, %v4619_v11  ;;  %v6654_v45 = vadd.f32 %v9462_v53, %v9456_v50  ;;  %v6635_v43 = vadd.f32 %v9458_v51, %v9452_v48 }
 0x219   :  { %9670 = vst [vmem:[#allocation17_spill] sm:$0xff] %v9528_v17  ;;  %v9530_v20 = vpop.f32.mrf.mxu0  ;;  %v6698_v53 = vadd.f32 %v9478_v62, %v9472_v58  ;;  %v6679_v48 = vadd.f32 %v9474_v59, %v9468_v56  ;;  %v9674_v59 = vld [vmem:[#allocation4_spill] sm:$0xff] }
 0x21a   :  { %9671 = vst [vmem:[#allocation18_spill] sm:$0xff] %v9530_v20  ;;  %v9542_v6 = vpop.f32.mrf.mxu1  ;;  %v4581_v17 = vadd.f32 %v6459_v12, %v4540_v9  ;;  %v4701_v8 = vadd.f32 %v6522_v16, %v4660_v2 }
 0x21b   :  { %v9544_v18 = vpop.f32.mrf.mxu0 }
 0x21c   :  { %v4622_v14 = vadd.f32 %v6481_v3, %v4581_v17  ;;  %v9548_v20 = vpop.f32.mrf.mxu1  ;;  %v4742_v9 = vadd.f32 %v6544_v13, %v4701_v8 }
 0x21d   :  { %v9550_v1 = vpop.f32.mrf.mxu0 }
 0x21e   :  { %v4663_v24 = vadd.f32 %v6503_v38, %v4622_v14  ;;  %v9562_v28 = vpop.f32.mrf.mxu1  ;;  %v4783_v27 = vadd.f32 %v6566_v25, %v4742_v9 }
 0x220   :  { %v4704_v11 = vadd.f32 %v6525_v21, %v4663_v24  ;;  %v4824_v17 = vadd.f32 %v6588_v29, %v4783_v27  ;;  %v9675_v29 = vld [vmem:[#allocation5_spill] sm:$0xff] }
 0x222   :  { %v4745_v32 = vadd.f32 %v6547_v26, %v4704_v11  ;;  %v4865_v34 = vadd.f32 %v6610_v33, %v4824_v17  ;;  %v9672_v11 = vld [vmem:[#allocation2_spill] sm:$0xff]  ;;  %v9673_v26 = vld [vmem:[#allocation3_spill] sm:$0xff] }
 0x223   :  { %v9558_v22 = vpop.f32.mrf.mxu0  ;;  %v6723_v27 = vadd.f32 %v9673_v26, %v9672_v11  ;;  %v9678_v33 = vld [vmem:[#allocation11_spill] sm:$0xff]  ;;  %v6833_v11 = vadd.f32 %v9550_v1, %v9544_v18 }
 0x224   :  { %v9564_v12 = vpop.f32.mrf.mxu1  ;;  %v4786_v19 = vadd.f32 %v6569_v30, %v4745_v32  ;;  %v4906_v3 = vadd.f32 %v6632_v35, %v4865_v34  ;;  %v6764_v30 = vadd.f32 %v9675_v29, %v9674_v59  ;;  %v9677_v32 = vld [vmem:[#allocation8_spill] sm:$0xff]  ;;  %v9679_v34 = vld [vmem:[#allocation7_spill] sm:$0xff]  ;;  %v9680_v35 = vld [vmem:[#allocation9_spill] sm:$0xff] }
 0x225   :  { %v9566_v23 = vpop.f32.mrf.mxu0  ;;  %v6786_v5 = vadd.f32 %v9678_v33, %v9677_v32 }
 0x226   :  { %v9576_v36 = vpop.f32.mrf.mxu1  ;;  %v4827_v42 = vadd.f32 %v6591_v31, %v4786_v19  ;;  %v4947_v44 = vadd.f32 %v6654_v45, %v4906_v3  ;;  %v9681_v45 = vld [vmem:[#allocation10_spill] sm:$0xff] }
 0x227   :  { %v9578_v16 = vpop.f32.mrf.mxu0  ;;  %v6808_v3 = vadd.f32 %v9512_v7, %v9681_v45 }
 0x228   :  { %v9586_v39 = vpop.f32.mrf.mxu1  ;;  %v4868_v2 = vadd.f32 %v6613_v37, %v4827_v42  ;;  %v4988_v38 = vadd.f32 %v6676_v46, %v4947_v44  ;;  %v6767_v37 = vadd.f32 %v9680_v35, %v9679_v34 }
 0x229   :  { %v9588_v41 = vpop.f32.mrf.mxu0 }
 0x22a   :  { %v9594_v40 = vpop.f32.mrf.mxu1  ;;  %v4909_v50 = vadd.f32 %v6635_v43, %v4868_v2  ;;  %v5029_v51 = vadd.f32 %v6698_v53, %v4988_v38  ;;  %v9682_v2 = vld [vmem:[#allocation12_spill] sm:$0xff]  ;;  %v9683_v43 = vld [vmem:[#allocation14_spill] sm:$0xff]  ;;  %v6877_v18 = vadd.f32 %v9588_v41, %v9578_v16 }
 0x22b   :  { %v6789_v44 = vadd.f32 %v9683_v43, %v9682_v2  ;;  %v9685_v53 = vld [vmem:[#allocation18_spill] sm:$0xff] }
 0x22c   :  { %v4950_v8 = vadd.f32 %v6657_v47, %v4909_v50  ;;  %v5070_v62 = vadd.f32 %v6720_v52, %v5029_v51  ;;  %v9684_v50 = vld [vmem:[#allocation15_spill] sm:$0xff] }
 0x22d   :  { %v6830_v38 = vadd.f32 %v9685_v53, %v9684_v50 }
 0x22e   :  { %v4991_v55 = vadd.f32 %v6679_v48, %v4950_v8  ;;  %v5111_v56 = vadd.f32 %v6742_v57, %v5070_v62 }
 0x230   :  { %v5032_v25 = vadd.f32 %v6701_v54, %v4991_v55  ;;  %v5152_v19 = vadd.f32 %v6764_v30, %v5111_v56  ;;  %v9686_v54 = vld [vmem:[#allocation13_spill] sm:$0xff]  ;;  %v9687_v55 = vld [vmem:[#allocation16_spill] sm:$0xff]  ;;  %v6874_v56 = vadd.f32 %v9566_v23, %v9558_v22 }
 0x231   :  { %v6811_v57 = vadd.f32 %v9687_v55, %v9686_v54 }
 0x232   :  { %v5073_v4 = vadd.f32 %v6723_v27, %v5032_v25  ;;  %v5193_v42 = vadd.f32 %v6786_v5, %v5152_v19  ;;  %v9688_v25 = vld [vmem:[#allocation17_spill] sm:$0xff] }
 0x233   :  { %v6852_v7 = vadd.f32 %v9542_v6, %v9688_v25  ;;  %v6896_v6 = vadd.f32 %v9576_v36, %v9564_v12 }
 0x234   :  { %v5114_v31 = vadd.f32 %v6745_v63, %v5073_v4  ;;  %v5234_v8 = vadd.f32 %v6808_v3, %v5193_v42  ;;  %v6855_v4 = vadd.f32 %v9562_v28, %v9548_v20 }
 0x236   :  { %v5155_v47 = vadd.f32 %v6767_v37, %v5114_v31  ;;  %v5275_v62 = vadd.f32 %v6830_v38, %v5234_v8  ;;  %v6899_v31 = vadd.f32 %v9594_v40, %v9586_v39 }
 0x238   :  { %v5196_v48 = vadd.f32 %v6789_v44, %v5155_v47  ;;  %v5316_v29 = vadd.f32 %v6852_v7, %v5275_v62 }
 0x23a   :  { %v5237_v27 = vadd.f32 %v6811_v57, %v5196_v48  ;;  %v5357_v32 = vadd.f32 %v6874_v56, %v5316_v29 }
 0x23c   :  { %v5278_v30 = vadd.f32 %v6833_v11, %v5237_v27  ;;  %v5398_v23 = vadd.f32 %v6896_v6, %v5357_v32 }
 0x23e   :  { %v5319_v1 = vadd.f32 %v6855_v4, %v5278_v30 }
 0x240   :  { %v5360_v19 = vadd.f32 %v6877_v18, %v5319_v1 }
 0x242   :  { %v5401_v12 = vadd.f32 %v6899_v31, %v5360_v19 }
 0x243   :  { %v9592_v61 = vpop.f32.mrf.mxu0 }
 0x244   :  { %v9602_v49 = vpop.f32.mrf.mxu1 }
 0x245   :  { %v6917_v14 = vpop.f32.mrf.mxu0 }
 0x246   :  { %v6939_v13 = vpop.f32.mrf.mxu1  ;;  %v6918_v33 = vadd.f32 %v6917_v14, %v9592_v61 }
 0x247   :  { %v6919_v21 = vpop.f32.mrf.mxu0  ;;  %v6940_v20 = vadd.f32 %v6939_v13, %v9602_v49 }
 0x248   :  { %v6941_v24 = vpop.f32.mrf.mxu1  ;;  %v5439_v34 = vadd.f32 %v6918_v33, %v5398_v23 }
 0x249   :  { %v6920_v58 = vpop.f32.mrf.mxu0 }
 0x24a   :  { %v6942_v0 = vpop.f32.mrf.mxu1  ;;  %v6921_v28 = vadd.f32 %v6920_v58, %v6919_v21  ;;  %v5480_v16 = vadd.f32 %v6940_v20, %v5439_v34 }
 0x24b   :  { %v6943_v61 = vadd.f32 %v6942_v0, %v6941_v24 }
 0x24c   :  { %v5442_v41 = vadd.f32 %v6921_v28, %v5401_v12 }
 0x24e   :  { %v5483_v47 = vadd.f32 %v6943_v61, %v5442_v41 }
 0x263   :  { %v6960_v9 = vpop.f32.mrf.mxu0 }
 0x264   :  { %v6982_v10 = vpop.f32.mrf.mxu1 }
 0x265   :  { %v6961_v17 = vpop.f32.mrf.mxu0 }
 0x266   :  { %v6983_v15 = vpop.f32.mrf.mxu1  ;;  %v6962_v36 = vadd.f32 %v6961_v17, %v6960_v9 }
 0x267   :  { %v6963_v46 = vpop.f32.mrf.mxu0  ;;  %v6984_v3 = vadd.f32 %v6983_v15, %v6982_v10 }
 0x268   :  { %v6985_v51 = vpop.f32.mrf.mxu1  ;;  %v5521_v14 = vadd.f32 %v6962_v36, %v5480_v16 }
 0x269   :  { %v6964_v52 = vpop.f32.mrf.mxu0 }
 0x26a   :  { %v6986_v59 = vpop.f32.mrf.mxu1  ;;  %v6965_v2 = vadd.f32 %v6964_v52, %v6963_v46  ;;  %v5562_v40 = vadd.f32 %v6984_v3, %v5521_v14 }
 0x26b   :  { %v6987_v21 = vadd.f32 %v6986_v59, %v6985_v51 }
 0x26c   :  { %v5524_v50 = vadd.f32 %v6965_v2, %v5483_v47 }
 0x26e   :  { %v5565_v17 = vadd.f32 %v6987_v21, %v5524_v50 }
 0x283   :  { %v7004_v26 = vpop.f32.mrf.mxu0 }
 0x284   :  { %v7026_v60 = vpop.f32.mrf.mxu1 }
 0x285   :  { %v7005_v63 = vpop.f32.mrf.mxu0 }
 0x286   :  { %v7027_v5 = vpop.f32.mrf.mxu1  ;;  %v7006_v39 = vadd.f32 %v7005_v63, %v7004_v26 }
 0x287   :  { %v7007_v22 = vpop.f32.mrf.mxu0  ;;  %v7028_v53 = vadd.f32 %v7027_v5, %v7026_v60 }
 0x288   :  { %v7029_v35 = vpop.f32.mrf.mxu1  ;;  %v5603_v58 = vadd.f32 %v7006_v39, %v5562_v40 }
 0x289   :  { %v7008_v37 = vpop.f32.mrf.mxu0 }
 0x28a   :  { %v7030_v45 = vpop.f32.mrf.mxu1  ;;  %v7009_v9 = vadd.f32 %v7008_v37, %v7007_v22  ;;  %v5644_v24 = vadd.f32 %v7028_v53, %v5603_v58 }
 0x28b   :  { %v7031_v10 = vadd.f32 %v7030_v45, %v7029_v35 }
 0x28c   :  { %v5606_v0 = vadd.f32 %v7009_v9, %v5565_v17 }
 0x28e   :  { %v5647_v57 = vadd.f32 %v7031_v10, %v5606_v0 }
 0x2a3   :  { %v7048_v42 = vpop.f32.mrf.mxu0 }
 0x2a4   :  { %v7070_v43 = vpop.f32.mrf.mxu1 }
 0x2a5   :  { %v7049_v44 = vpop.f32.mrf.mxu0 }
 0x2a6   :  { %v7071_v49 = vpop.f32.mrf.mxu1  ;;  %v7050_v38 = vadd.f32 %v7049_v44, %v7048_v42 }
 0x2a7   :  { %v7051_v13 = vpop.f32.mrf.mxu0  ;;  %v7072_v46 = vadd.f32 %v7071_v49, %v7070_v43 }
 0x2a8   :  { %v7073_v8 = vpop.f32.mrf.mxu1  ;;  %v5685_v15 = vadd.f32 %v7050_v38, %v5644_v24 }
 0x2a9   :  { %v7052_v48 = vpop.f32.mrf.mxu0 }
 0x2aa   :  { %v7053_v52 = vadd.f32 %v7052_v48, %v7051_v13  ;;  %v7074_v54 = vpop.f32.mrf.mxu1  ;;  %v5726_v7 = vadd.f32 %v7072_v46, %v5685_v15 }
 0x2ab   :  { %v7075_v56 = vadd.f32 %v7074_v54, %v7073_v8 }
 0x2ac   :  { %v5688_v51 = vadd.f32 %v7053_v52, %v5647_v57 }
 0x2ae   :  { %v5729_v60 = vadd.f32 %v7075_v56, %v5688_v51 }
 0x2c3   :  { %v7092_v55 = vpop.f32.mrf.mxu0 }
 0x2c4   :  { %v7114_v62 = vpop.f32.mrf.mxu1 }
 0x2c5   :  { %v7093_v25 = vpop.f32.mrf.mxu0 }
 0x2c6   :  { %v7094_v11 = vadd.f32 %v7093_v25, %v7092_v55  ;;  %v7115_v26 = vpop.f32.mrf.mxu1 }
 0x2c7   :  { %v7095_v27 = vpop.f32.mrf.mxu0  ;;  %v7116_v63 = vadd.f32 %v7115_v26, %v7114_v62 }
 0x2c8   :  { %v5767_v59 = vadd.f32 %v7094_v11, %v5726_v7  ;;  %v7117_v29 = vpop.f32.mrf.mxu1 }
 0x2c9   :  { %v7096_v30 = vpop.f32.mrf.mxu0 }
 0x2ca   :  { %v7097_v4 = vadd.f32 %v7096_v30, %v7095_v27  ;;  %v7118_v32 = vpop.f32.mrf.mxu1  ;;  %v5808_v6 = vadd.f32 %v7116_v63, %v5767_v59 }
 0x2cb   :  { %v7119_v1 = vadd.f32 %v7118_v32, %v7117_v29 }
 0x2cc   :  { %v5770_v18 = vadd.f32 %v7097_v4, %v5729_v60  ;;  %v5814_v5 = vmax.f32 %v5808_v6, 0.0 }
 0x2ce   :  { %v5811_v33 = vadd.f32 %v7119_v1, %v5770_v18 }
 0x2d0   :  { %v5815_v22 = vmax.f32 %v5811_v33, 0.0 }
 0x2d2   :  { %v6414_v23 = vpack.c.bf16 %v5815_v22, %v5814_v5 }
 0x2d4   :  { %6415 = vst [vmem:[%s9654_s3] sm:$0xff] %v6414_v23  }

</bundles_post_ra>
